<compile_context>
chip_gen: v6e
topology: v6e:2x2x1
jax: 0.10.0
libtpu: 0.0.40
codegen_flags: <defaults>
</compile_context>

<pallas_src>
import jax
import jax.numpy as jnp
from jax.experimental import pallas as pl
from jax.experimental.pallas import tpu as pltpu

INPUT_DIM = 11
HIDDEN_DIM = 32
NUM_LAYERS = 2   # kernel body is hard-wired to 2 layers
OUTPUT_DIM = 1


def _lstm_kernel(x_ref,      # (T*Bp, Dp)  time-major, batch/D zero-padded input
                 wih0_ref,   # (Dp, 4H)    layer-0 input weights (transposed, zero-padded rows)
                 b0_ref,     # (1, 4H)     layer-0 summed bias
                 whh0_ref,   # (H, 4H)     layer-0 recurrent weights (transposed)
                 wih1_ref,   # (H, 4H)     layer-1 input weights (transposed)
                 whh1_ref,   # (H, 4H)     layer-1 recurrent weights (transposed)
                 b1_ref,     # (1, 4H)     layer-1 summed bias
                 fcw_ref,    # (1, H)      fc weight row
                 fcb_ref,    # (1, 1)      fc bias
                 out_ref,    # (Bp, 1)
                 xp_ref):    # (T*Bp, 4H)  VMEM scratch: precomputed layer-0 gates
    H = HIDDEN_DIM
    G = 4 * H
    Bp = out_ref.shape[0]
    T = x_ref.shape[0] // Bp

    # ---- Prologue: layer-0 input projection for ALL timesteps in one MXU
    # matmul (no recurrence dependence), bias folded in.  Result stays in VMEM.
    xp_ref[...] = (jnp.dot(x_ref[...], wih0_ref[...],
                           preferred_element_type=jnp.float32) + b0_ref[...])

    # ---- Hoist loop-invariant loads / broadcasts out of the recurrence.
    whh0 = whh0_ref[...]
    wih1 = wih1_ref[...]
    whh1 = whh1_ref[...]
    b1 = jnp.broadcast_to(b1_ref[...], (Bp, G))
    fcw = fcw_ref[...]
    fcb = fcb_ref[...]

    # Per-lane 0.5 pre-scale on the i/f/o gate ranges (g keeps 1.0) so that a
    # single tanh over the whole (Bp, 4H) tile yields both sigmoid and tanh:
    #   sigmoid(x) = 0.5 * (tanh(x/2) + 1)
    lane = jax.lax.broadcasted_iota(jnp.int32, (Bp, G), 1)
    half_mask = jnp.where((lane >= 2 * H) & (lane < 3 * H),
                          jnp.float32(1.0), jnp.float32(0.5))

    def gates_to_hc(gates, c):
        # One full-width tanh per gate tile (was sigmoid + tanh), then cheap
        # VPU fixups on the i/f/o slices.  PyTorch gate order: [i | f | g | o].
        t = jnp.tanh(gates * half_mask)
        i = t[:, 0 * H:1 * H] * 0.5 + 0.5
        f = t[:, 1 * H:2 * H] * 0.5 + 0.5
        g = t[:, 2 * H:3 * H]
        o = t[:, 3 * H:4 * H] * 0.5 + 0.5
        c_new = f * c + i * g
        h_new = o * jnp.tanh(c_new)
        return h_new, c_new

    def step(t_idx, carry):
        h1, c1, h2, c2 = carry
        # Previous-state recurrent projections first: both depend only on the
        # previous step's state, so the h2@Whh1 push hides under layer-0
        # compute instead of waiting for h1_new (no per-step concat needed).
        rec0 = jnp.dot(h1, whh0, preferred_element_type=jnp.float32)
        rec1 = jnp.dot(h2, whh1, preferred_element_type=jnp.float32)

        row = pl.multiple_of(t_idx * Bp, Bp)
        g0 = xp_ref[pl.ds(row, Bp), :] + rec0          # bias already folded in
        h1, c1 = gates_to_hc(g0, c1)

        g1 = jnp.dot(h1, wih1, preferred_element_type=jnp.float32) + rec1 + b1
        h2, c2 = gates_to_hc(g1, c2)
        return (h1, c1, h2, c2)

    z = jnp.zeros((Bp, H), jnp.float32)
    unroll = T if T <= 32 else 16
    _, _, h2, _ = jax.lax.fori_loop(0, T, step, (z, z, z, z), unroll=unroll)

    # fc head (OUTPUT_DIM == 1): VPU multiply + lane reduce (no MXU drain for
    # a single useful output lane).
    out_ref[...] = jnp.sum(h2 * fcw, axis=-1, keepdims=True) + fcb


def _full_spec(shape):
    n = len(shape)
    return pl.BlockSpec(shape, lambda i, _n=n: (0,) * _n)


@jax.jit
def lstm_forward(x, params):
    """x: (B, T, INPUT_DIM) float32 -> (B, OUTPUT_DIM) float32."""
    B, T, D = x.shape
    assert D == INPUT_DIM
    H = HIDDEN_DIM
    Bp = max(8, ((B + 7) // 8) * 8)     # pad batch to a full sublane group
    Dp = ((D + 7) // 8) * 8             # zero-pad contraction dim (11 -> 16)

    # Time-major, batch-padded, D-padded, flattened to (T*Bp, Dp) so the
    # kernel can do the whole layer-0 input projection as one MXU matmul.
    x_tm = jnp.transpose(x, (1, 0, 2)).astype(jnp.float32)            # (T, B, D)
    x_tm = jnp.pad(x_tm, ((0, 0), (0, Bp - B), (0, Dp - D)))          # (T, Bp, Dp)
    x2d = x_tm.reshape(T * Bp, Dp)

    wih0 = jnp.pad(params["weight_ih_l0"].T, ((0, Dp - D), (0, 0)))   # (Dp, 4H)
    b0 = (params["bias_ih_l0"] + params["bias_hh_l0"]).reshape(1, 4 * H)
    whh0 = params["weight_hh_l0"].T                                   # (H, 4H)
    wih1 = params["weight_ih_l1"].T                                   # (H, 4H)
    whh1 = params["weight_hh_l1"].T                                   # (H, 4H)
    b1 = (params["bias_ih_l1"] + params["bias_hh_l1"]).reshape(1, 4 * H)
    fcw = params["fc_weight"].reshape(1, H)
    fcb = params["fc_bias"].reshape(1, 1)

    out = pl.pallas_call(
        _lstm_kernel,
        out_shape=jax.ShapeDtypeStruct((Bp, OUTPUT_DIM), jnp.float32),
        grid_spec=pltpu.PrefetchScalarGridSpec(
            num_scalar_prefetch=0,
            grid=(1,),                           # whole recurrence in one invocation
            in_specs=[
                _full_spec(x2d.shape),
                _full_spec(wih0.shape),
                _full_spec(b0.shape),
                _full_spec(whh0.shape),
                _full_spec(wih1.shape),
                _full_spec(whh1.shape),
                _full_spec(b1.shape),
                _full_spec(fcw.shape),
                _full_spec(fcb.shape),
            ],
            out_specs=pl.BlockSpec((Bp, OUTPUT_DIM), lambda i: (0, 0)),
            scratch_shapes=[pltpu.VMEM((T * Bp, 4 * H), jnp.float32)],
        ),
        compiler_params=pltpu.CompilerParams(
            dimension_semantics=("arbitrary",),
            vmem_limit_bytes=32 * 1024 * 1024),
    )(x2d, wih0, b0, whh0, wih1, whh1, b1, fcw, fcb)

    return out[:B]


def init_params(key):
    """Deterministic init matching PyTorch shapes (uniform(-1/sqrt(H), 1/sqrt(H)))."""
    H, D = HIDDEN_DIM, INPUT_DIM
    k = 1.0 / jnp.sqrt(jnp.float32(H))
    names_shapes = [
        ("weight_ih_l0", (4 * H, D)),
        ("weight_hh_l0", (4 * H, H)),
        ("bias_ih_l0", (4 * H,)),
        ("bias_hh_l0", (4 * H,)),
        ("weight_ih_l1", (4 * H, H)),
        ("weight_hh_l1", (4 * H, H)),
        ("bias_ih_l1", (4 * H,)),
        ("bias_hh_l1", (4 * H,)),
        ("fc_weight", (OUTPUT_DIM, H)),
        ("fc_bias", (OUTPUT_DIM,)),
    ]
    params = {}
    keys = jax.random.split(key, len(names_shapes))
    for (name, shape), kk in zip(names_shapes, keys):
        params[name] = jax.random.uniform(kk, shape, jnp.float32, -k, k)
    return params


def lstm_reference(x, params):
    """Pure-JAX reference (lax.scan) for sanity checking the kernel."""
    H = HIDDEN_DIM
    B = x.shape[0]
    x_tm = jnp.transpose(x, (1, 0, 2))

    def cell(x_t, h, c, wih, whh, bih, bhh):
        gates = x_t @ wih.T + h @ whh.T + bih + bhh
        i = jax.nn.sigmoid(gates[:, 0 * H:1 * H])
        f = jax.nn.sigmoid(gates[:, 1 * H:2 * H])
        g = jnp.tanh(gates[:, 2 * H:3 * H])
        o = jax.nn.sigmoid(gates[:, 3 * H:4 * H])
        c_new = f * c + i * g
        return o * jnp.tanh(c_new), c_new

    def step(carry, x_t):
        h1, c1, h2, c2 = carry
        h1, c1 = cell(x_t, h1, c1, params["weight_ih_l0"], params["weight_hh_l0"],
                      params["bias_ih_l0"], params["bias_hh_l0"])
        h2, c2 = cell(h1, h2, c2, params["weight_ih_l1"], params["weight_hh_l1"],
                      params["bias_ih_l1"], params["bias_hh_l1"])
        return (h1, c1, h2, c2), None

    z = jnp.zeros((B, H), jnp.float32)
    (h1, c1, h2, c2), _ = jax.lax.scan(step, (z, z, z, z), x_tm)
    return h2 @ params["fc_weight"].T + params["fc_bias"]


if __name__ == "__main__":
    key = jax.random.PRNGKey(0)
    k_param, k_x = jax.random.split(key)

    B, T = 2, 8
    params = init_params(k_param)
    x = jax.random.normal(k_x, (B, T, INPUT_DIM), jnp.float32)

    out = jax.block_until_ready(lstm_forward(x, params))
    ref = jax.block_until_ready(lstm_reference(x, params))

    assert out.shape == (B, OUTPUT_DIM)
    # sigmoid-via-tanh identity introduces only ULP-level drift vs jax.nn.sigmoid
    assert jnp.allclose(out, ref, atol=1e-4, rtol=1e-4), (out, ref)

    print("KERNEL_OK")
</pallas_src>

<mosaic_0001>
module attributes {stable_mosaic.version = 11 : i64} {
  func.func @_lstm_kernel(%arg0: i32, %arg1: memref<64x16xf32, #tpu.memory_space<vmem>>, %arg2: memref<16x128xf32, #tpu.memory_space<vmem>>, %arg3: memref<1x128xf32, #tpu.memory_space<vmem>>, %arg4: memref<32x128xf32, #tpu.memory_space<vmem>>, %arg5: memref<32x128xf32, #tpu.memory_space<vmem>>, %arg6: memref<32x128xf32, #tpu.memory_space<vmem>>, %arg7: memref<1x128xf32, #tpu.memory_space<vmem>>, %arg8: memref<1x32xf32, #tpu.memory_space<vmem>>, %arg9: memref<1x1xf32, #tpu.memory_space<vmem>>, %arg10: memref<8x1xf32, #tpu.memory_space<vmem>>, %arg11: memref<64x128xf32, #tpu.memory_space<vmem>>) attributes {dimension_semantics = [#tpu.dimension_semantics<arbitrary>], iteration_bounds = array<i64: 1>, scalar_prefetch = 0 : i64, scratch_operands = 1 : i64, tpu.core_type = #tpu.core_type<tc>, window_params = [{pipeline_mode = #tpu.pipeline_mode<synchronous>, transform_indices = @transform_0, window_bounds = array<i64: 64, 16>}, {pipeline_mode = #tpu.pipeline_mode<synchronous>, transform_indices = @transform_1, window_bounds = array<i64: 16, 128>}, {pipeline_mode = #tpu.pipeline_mode<synchronous>, transform_indices = @transform_2, window_bounds = array<i64: 1, 128>}, {pipeline_mode = #tpu.pipeline_mode<synchronous>, transform_indices = @transform_3, window_bounds = array<i64: 32, 128>}, {pipeline_mode = #tpu.pipeline_mode<synchronous>, transform_indices = @transform_4, window_bounds = array<i64: 32, 128>}, {pipeline_mode = #tpu.pipeline_mode<synchronous>, transform_indices = @transform_5, window_bounds = array<i64: 32, 128>}, {pipeline_mode = #tpu.pipeline_mode<synchronous>, transform_indices = @transform_6, window_bounds = array<i64: 1, 128>}, {pipeline_mode = #tpu.pipeline_mode<synchronous>, transform_indices = @transform_7, window_bounds = array<i64: 1, 32>}, {pipeline_mode = #tpu.pipeline_mode<synchronous>, transform_indices = @transform_8, window_bounds = array<i64: 1, 1>}, {pipeline_mode = #tpu.pipeline_mode<synchronous>, transform_indices = @transform_9, window_bounds = array<i64: 8, 1>}]} {
    %c0 = arith.constant 0 : index
    %c0_0 = arith.constant 0 : index
    %0 = vector.load %arg1[%c0, %c0_0] : memref<64x16xf32, #tpu.memory_space<vmem>>, vector<64x16xf32>
    %c0_1 = arith.constant 0 : index
    %c0_2 = arith.constant 0 : index
    %1 = vector.load %arg2[%c0_1, %c0_2] : memref<16x128xf32, #tpu.memory_space<vmem>>, vector<16x128xf32>
    %cst = arith.constant dense<0.000000e+00> : vector<64x128xf32>
    %2 = tpu.matmul %0, %1, %cst {dimension_numbers = #tpu.dot_dimension_numbers<[1], [0], [0], [1], [0, 0, 1, 1], [], []>} : vector<64x16xf32>, vector<16x128xf32>, vector<64x128xf32> -> vector<64x128xf32>
    %c0_3 = arith.constant 0 : index
    %c0_4 = arith.constant 0 : index
    %3 = vector.load %arg3[%c0_3, %c0_4] : memref<1x128xf32, #tpu.memory_space<vmem>>, vector<1x128xf32>
    %4 = vector.broadcast %3 : vector<1x128xf32> to vector<64x128xf32>
    %5 = arith.addf %2, %4 : vector<64x128xf32>
    %c0_5 = arith.constant 0 : index
    %c0_6 = arith.constant 0 : index
    %6 = vector.load %arg11[%c0_5, %c0_6] : memref<64x128xf32, #tpu.memory_space<vmem>>, vector<64x128xf32>
    tpu.vector_store %arg11[%c0_5, %c0_6], %5 {strides = array<i32>} : memref<64x128xf32, #tpu.memory_space<vmem>>, vector<64x128xf32>,
    %c0_7 = arith.constant 0 : index
    %c0_8 = arith.constant 0 : index
    %7 = vector.load %arg4[%c0_7, %c0_8] : memref<32x128xf32, #tpu.memory_space<vmem>>, vector<32x128xf32>
    %c0_9 = arith.constant 0 : index
    %c0_10 = arith.constant 0 : index
    %8 = vector.load %arg5[%c0_9, %c0_10] : memref<32x128xf32, #tpu.memory_space<vmem>>, vector<32x128xf32>
    %c0_11 = arith.constant 0 : index
    %c0_12 = arith.constant 0 : index
    %9 = vector.load %arg6[%c0_11, %c0_12] : memref<32x128xf32, #tpu.memory_space<vmem>>, vector<32x128xf32>
    %c0_13 = arith.constant 0 : index
    %c0_14 = arith.constant 0 : index
    %10 = vector.load %arg7[%c0_13, %c0_14] : memref<1x128xf32, #tpu.memory_space<vmem>>, vector<1x128xf32>
    %11 = vector.shape_cast %10 : vector<1x128xf32> to vector<1x128xf32>
    %12 = vector.broadcast %11 : vector<1x128xf32> to vector<8x128xf32>
    %c0_15 = arith.constant 0 : index
    %c0_16 = arith.constant 0 : index
    %13 = vector.load %arg8[%c0_15, %c0_16] : memref<1x32xf32, #tpu.memory_space<vmem>>, vector<1x32xf32>
    %c0_17 = arith.constant 0 : index
    %c0_18 = arith.constant 0 : index
    %14 = vector.load %arg9[%c0_17, %c0_18] : memref<1x1xf32, #tpu.memory_space<vmem>>, vector<1x1xf32>
    %15 = tpu.iota {dimensions = array<i32: 1>} : vector<8x128xi32>
    %c64_i32 = arith.constant 64 : i32
    %16 = vector.broadcast %c64_i32 : i32 to vector<8x128xi32>
    %17 = arith.cmpi sge, %15, %16 : vector<8x128xi32>
    %c96_i32 = arith.constant 96 : i32
    %18 = vector.broadcast %c96_i32 : i32 to vector<8x128xi32>
    %19 = arith.cmpi slt, %15, %18 : vector<8x128xi32>
    %20 = arith.andi %17, %19 : vector<8x128xi1>
    %cst_19 = arith.constant 1.000000e+00 : f32
    %cst_20 = arith.constant 5.000000e-01 : f32
    %21 = vector.broadcast %cst_19 : f32 to vector<8x128xf32>
    %22 = vector.broadcast %cst_20 : f32 to vector<8x128xf32>
    %23 = arith.select %20, %21, %22 : vector<8x128xi1>, vector<8x128xf32>
    %cst_21 = arith.constant 0.000000e+00 : f32
    %24 = vector.broadcast %cst_21 : f32 to vector<8x32xf32>
    %c0_i32 = arith.constant 0 : i32
    %cst_22 = arith.constant dense<0.000000e+00> : vector<8x128xf32>
    %25 = tpu.matmul %24, %7, %cst_22 {dimension_numbers = #tpu.dot_dimension_numbers<[1], [0], [0], [1], [0, 0, 1, 1], [], []>} : vector<8x32xf32>, vector<32x128xf32>, vector<8x128xf32> -> vector<8x128xf32>
    %cst_23 = arith.constant dense<0.000000e+00> : vector<8x128xf32>
    %26 = tpu.matmul %24, %9, %cst_23 {dimension_numbers = #tpu.dot_dimension_numbers<[1], [0], [0], [1], [0, 0, 1, 1], [], []>} : vector<8x32xf32>, vector<32x128xf32>, vector<8x128xf32> -> vector<8x128xf32>
    %c8_i32 = arith.constant 8 : i32
    %27 = arith.muli %c0_i32, %c8_i32 : i32
    %28 = tpu.assume_multiple %27, 8 : i32
    %29 = arith.index_cast %28 : i32 to index
    %c0_24 = arith.constant 0 : index
    %30 = vector.load %arg11[%29, %c0_24] : memref<64x128xf32, #tpu.memory_space<vmem>>, vector<8x128xf32>
    %31 = arith.addf %30, %25 : vector<8x128xf32>
    %32 = arith.mulf %31, %23 : vector<8x128xf32>
    %33 = math.tanh %32 : vector<8x128xf32>
    %34 = vector.extract_strided_slice %33 {offsets = [0, 0], sizes = [8, 32], strides = [1, 1]} : vector<8x128xf32> to vector<8x32xf32>
    %cst_25 = arith.constant 5.000000e-01 : f32
    %35 = vector.broadcast %cst_25 : f32 to vector<8x32xf32>
    %36 = arith.mulf %34, %35 : vector<8x32xf32>
    %cst_26 = arith.constant 5.000000e-01 : f32
    %37 = vector.broadcast %cst_26 : f32 to vector<8x32xf32>
    %38 = arith.addf %36, %37 : vector<8x32xf32>
    %39 = vector.extract_strided_slice %33 {offsets = [0, 32], sizes = [8, 32], strides = [1, 1]} : vector<8x128xf32> to vector<8x32xf32>
    %cst_27 = arith.constant 5.000000e-01 : f32
    %40 = vector.broadcast %cst_27 : f32 to vector<8x32xf32>
    %41 = arith.mulf %39, %40 : vector<8x32xf32>
    %cst_28 = arith.constant 5.000000e-01 : f32
    %42 = vector.broadcast %cst_28 : f32 to vector<8x32xf32>
    %43 = arith.addf %41, %42 : vector<8x32xf32>
    %44 = vector.extract_strided_slice %33 {offsets = [0, 64], sizes = [8, 32], strides = [1, 1]} : vector<8x128xf32> to vector<8x32xf32>
    %45 = vector.extract_strided_slice %33 {offsets = [0, 96], sizes = [8, 32], strides = [1, 1]} : vector<8x128xf32> to vector<8x32xf32>
    %cst_29 = arith.constant 5.000000e-01 : f32
    %46 = vector.broadcast %cst_29 : f32 to vector<8x32xf32>
    %47 = arith.mulf %45, %46 : vector<8x32xf32>
    %cst_30 = arith.constant 5.000000e-01 : f32
    %48 = vector.broadcast %cst_30 : f32 to vector<8x32xf32>
    %49 = arith.addf %47, %48 : vector<8x32xf32>
    %50 = arith.mulf %43, %24 : vector<8x32xf32>
    %51 = arith.mulf %38, %44 : vector<8x32xf32>
    %52 = arith.addf %50, %51 : vector<8x32xf32>
    %53 = math.tanh %52 : vector<8x32xf32>
    %54 = arith.mulf %49, %53 : vector<8x32xf32>
    %cst_31 = arith.constant dense<0.000000e+00> : vector<8x128xf32>
    %55 = tpu.matmul %54, %8, %cst_31 {dimension_numbers = #tpu.dot_dimension_numbers<[1], [0], [0], [1], [0, 0, 1, 1], [], []>} : vector<8x32xf32>, vector<32x128xf32>, vector<8x128xf32> -> vector<8x128xf32>
    %56 = arith.addf %55, %26 : vector<8x128xf32>
    %57 = arith.addf %56, %12 : vector<8x128xf32>
    %58 = arith.mulf %57, %23 : vector<8x128xf32>
    %59 = math.tanh %58 : vector<8x128xf32>
    %60 = vector.extract_strided_slice %59 {offsets = [0, 0], sizes = [8, 32], strides = [1, 1]} : vector<8x128xf32> to vector<8x32xf32>
    %cst_32 = arith.constant 5.000000e-01 : f32
    %61 = vector.broadcast %cst_32 : f32 to vector<8x32xf32>
    %62 = arith.mulf %60, %61 : vector<8x32xf32>
    %cst_33 = arith.constant 5.000000e-01 : f32
    %63 = vector.broadcast %cst_33 : f32 to vector<8x32xf32>
    %64 = arith.addf %62, %63 : vector<8x32xf32>
    %65 = vector.extract_strided_slice %59 {offsets = [0, 32], sizes = [8, 32], strides = [1, 1]} : vector<8x128xf32> to vector<8x32xf32>
    %cst_34 = arith.constant 5.000000e-01 : f32
    %66 = vector.broadcast %cst_34 : f32 to vector<8x32xf32>
    %67 = arith.mulf %65, %66 : vector<8x32xf32>
    %cst_35 = arith.constant 5.000000e-01 : f32
    %68 = vector.broadcast %cst_35 : f32 to vector<8x32xf32>
    %69 = arith.addf %67, %68 : vector<8x32xf32>
    %70 = vector.extract_strided_slice %59 {offsets = [0, 64], sizes = [8, 32], strides = [1, 1]} : vector<8x128xf32> to vector<8x32xf32>
    %71 = vector.extract_strided_slice %59 {offsets = [0, 96], sizes = [8, 32], strides = [1, 1]} : vector<8x128xf32> to vector<8x32xf32>
    %cst_36 = arith.constant 5.000000e-01 : f32
    %72 = vector.broadcast %cst_36 : f32 to vector<8x32xf32>
    %73 = arith.mulf %71, %72 : vector<8x32xf32>
    %cst_37 = arith.constant 5.000000e-01 : f32
    %74 = vector.broadcast %cst_37 : f32 to vector<8x32xf32>
    %75 = arith.addf %73, %74 : vector<8x32xf32>
    %76 = arith.mulf %69, %24 : vector<8x32xf32>
    %77 = arith.mulf %64, %70 : vector<8x32xf32>
    %78 = arith.addf %76, %77 : vector<8x32xf32>
    %79 = math.tanh %78 : vector<8x32xf32>
    %80 = arith.mulf %75, %79 : vector<8x32xf32>
    %c1_i32 = arith.constant 1 : i32
    %cst_38 = arith.constant dense<0.000000e+00> : vector<8x128xf32>
    %81 = tpu.matmul %54, %7, %cst_38 {dimension_numbers = #tpu.dot_dimension_numbers<[1], [0], [0], [1], [0, 0, 1, 1], [], []>} : vector<8x32xf32>, vector<32x128xf32>, vector<8x128xf32> -> vector<8x128xf32>
    %cst_39 = arith.constant dense<0.000000e+00> : vector<8x128xf32>
    %82 = tpu.matmul %80, %9, %cst_39 {dimension_numbers = #tpu.dot_dimension_numbers<[1], [0], [0], [1], [0, 0, 1, 1], [], []>} : vector<8x32xf32>, vector<32x128xf32>, vector<8x128xf32> -> vector<8x128xf32>
    %c8_i32_40 = arith.constant 8 : i32
    %83 = arith.muli %c1_i32, %c8_i32_40 : i32
    %84 = tpu.assume_multiple %83, 8 : i32
    %85 = arith.index_cast %84 : i32 to index
    %c0_41 = arith.constant 0 : index
    %86 = vector.load %arg11[%85, %c0_41] : memref<64x128xf32, #tpu.memory_space<vmem>>, vector<8x128xf32>
    %87 = arith.addf %86, %81 : vector<8x128xf32>
    %88 = arith.mulf %87, %23 : vector<8x128xf32>
    %89 = math.tanh %88 : vector<8x128xf32>
    %90 = vector.extract_strided_slice %89 {offsets = [0, 0], sizes = [8, 32], strides = [1, 1]} : vector<8x128xf32> to vector<8x32xf32>
    %cst_42 = arith.constant 5.000000e-01 : f32
    %91 = vector.broadcast %cst_42 : f32 to vector<8x32xf32>
    %92 = arith.mulf %90, %91 : vector<8x32xf32>
    %cst_43 = arith.constant 5.000000e-01 : f32
    %93 = vector.broadcast %cst_43 : f32 to vector<8x32xf32>
    %94 = arith.addf %92, %93 : vector<8x32xf32>
    %95 = vector.extract_strided_slice %89 {offsets = [0, 32], sizes = [8, 32], strides = [1, 1]} : vector<8x128xf32> to vector<8x32xf32>
    %cst_44 = arith.constant 5.000000e-01 : f32
    %96 = vector.broadcast %cst_44 : f32 to vector<8x32xf32>
    %97 = arith.mulf %95, %96 : vector<8x32xf32>
    %cst_45 = arith.constant 5.000000e-01 : f32
    %98 = vector.broadcast %cst_45 : f32 to vector<8x32xf32>
    %99 = arith.addf %97, %98 : vector<8x32xf32>
    %100 = vector.extract_strided_slice %89 {offsets = [0, 64], sizes = [8, 32], strides = [1, 1]} : vector<8x128xf32> to vector<8x32xf32>
    %101 = vector.extract_strided_slice %89 {offsets = [0, 96], sizes = [8, 32], strides = [1, 1]} : vector<8x128xf32> to vector<8x32xf32>
    %cst_46 = arith.constant 5.000000e-01 : f32
    %102 = vector.broadcast %cst_46 : f32 to vector<8x32xf32>
    %103 = arith.mulf %101, %102 : vector<8x32xf32>
    %cst_47 = arith.constant 5.000000e-01 : f32
    %104 = vector.broadcast %cst_47 : f32 to vector<8x32xf32>
    %105 = arith.addf %103, %104 : vector<8x32xf32>
    %106 = arith.mulf %99, %52 : vector<8x32xf32>
    %107 = arith.mulf %94, %100 : vector<8x32xf32>
    %108 = arith.addf %106, %107 : vector<8x32xf32>
    %109 = math.tanh %108 : vector<8x32xf32>
    %110 = arith.mulf %105, %109 : vector<8x32xf32>
    %cst_48 = arith.constant dense<0.000000e+00> : vector<8x128xf32>
    %111 = tpu.matmul %110, %8, %cst_48 {dimension_numbers = #tpu.dot_dimension_numbers<[1], [0], [0], [1], [0, 0, 1, 1], [], []>} : vector<8x32xf32>, vector<32x128xf32>, vector<8x128xf32> -> vector<8x128xf32>
    %112 = arith.addf %111, %82 : vector<8x128xf32>
    %113 = arith.addf %112, %12 : vector<8x128xf32>
    %114 = arith.mulf %113, %23 : vector<8x128xf32>
    %115 = math.tanh %114 : vector<8x128xf32>
    %116 = vector.extract_strided_slice %115 {offsets = [0, 0], sizes = [8, 32], strides = [1, 1]} : vector<8x128xf32> to vector<8x32xf32>
    %cst_49 = arith.constant 5.000000e-01 : f32
    %117 = vector.broadcast %cst_49 : f32 to vector<8x32xf32>
    %118 = arith.mulf %116, %117 : vector<8x32xf32>
    %cst_50 = arith.constant 5.000000e-01 : f32
    %119 = vector.broadcast %cst_50 : f32 to vector<8x32xf32>
    %120 = arith.addf %118, %119 : vector<8x32xf32>
    %121 = vector.extract_strided_slice %115 {offsets = [0, 32], sizes = [8, 32], strides = [1, 1]} : vector<8x128xf32> to vector<8x32xf32>
    %cst_51 = arith.constant 5.000000e-01 : f32
    %122 = vector.broadcast %cst_51 : f32 to vector<8x32xf32>
    %123 = arith.mulf %121, %122 : vector<8x32xf32>
    %cst_52 = arith.constant 5.000000e-01 : f32
    %124 = vector.broadcast %cst_52 : f32 to vector<8x32xf32>
    %125 = arith.addf %123, %124 : vector<8x32xf32>
    %126 = vector.extract_strided_slice %115 {offsets = [0, 64], sizes = [8, 32], strides = [1, 1]} : vector<8x128xf32> to vector<8x32xf32>
    %127 = vector.extract_strided_slice %115 {offsets = [0, 96], sizes = [8, 32], strides = [1, 1]} : vector<8x128xf32> to vector<8x32xf32>
    %cst_53 = arith.constant 5.000000e-01 : f32
    %128 = vector.broadcast %cst_53 : f32 to vector<8x32xf32>
    %129 = arith.mulf %127, %128 : vector<8x32xf32>
    %cst_54 = arith.constant 5.000000e-01 : f32
    %130 = vector.broadcast %cst_54 : f32 to vector<8x32xf32>
    %131 = arith.addf %129, %130 : vector<8x32xf32>
    %132 = arith.mulf %125, %78 : vector<8x32xf32>
    %133 = arith.mulf %120, %126 : vector<8x32xf32>
    %134 = arith.addf %132, %133 : vector<8x32xf32>
    %135 = math.tanh %134 : vector<8x32xf32>
    %136 = arith.mulf %131, %135 : vector<8x32xf32>
    %c2_i32 = arith.constant 2 : i32
    %cst_55 = arith.constant dense<0.000000e+00> : vector<8x128xf32>
    %137 = tpu.matmul %110, %7, %cst_55 {dimension_numbers = #tpu.dot_dimension_numbers<[1], [0], [0], [1], [0, 0, 1, 1], [], []>} : vector<8x32xf32>, vector<32x128xf32>, vector<8x128xf32> -> vector<8x128xf32>
    %cst_56 = arith.constant dense<0.000000e+00> : vector<8x128xf32>
    %138 = tpu.matmul %136, %9, %cst_56 {dimension_numbers = #tpu.dot_dimension_numbers<[1], [0], [0], [1], [0, 0, 1, 1], [], []>} : vector<8x32xf32>, vector<32x128xf32>, vector<8x128xf32> -> vector<8x128xf32>
    %c8_i32_57 = arith.constant 8 : i32
    %139 = arith.muli %c2_i32, %c8_i32_57 : i32
    %140 = tpu.assume_multiple %139, 8 : i32
    %141 = arith.index_cast %140 : i32 to index
    %c0_58 = arith.constant 0 : index
    %142 = vector.load %arg11[%141, %c0_58] : memref<64x128xf32, #tpu.memory_space<vmem>>, vector<8x128xf32>
    %143 = arith.addf %142, %137 : vector<8x128xf32>
    %144 = arith.mulf %143, %23 : vector<8x128xf32>
    %145 = math.tanh %144 : vector<8x128xf32>
    %146 = vector.extract_strided_slice %145 {offsets = [0, 0], sizes = [8, 32], strides = [1, 1]} : vector<8x128xf32> to vector<8x32xf32>
    %cst_59 = arith.constant 5.000000e-01 : f32
    %147 = vector.broadcast %cst_59 : f32 to vector<8x32xf32>
    %148 = arith.mulf %146, %147 : vector<8x32xf32>
    %cst_60 = arith.constant 5.000000e-01 : f32
    %149 = vector.broadcast %cst_60 : f32 to vector<8x32xf32>
    %150 = arith.addf %148, %149 : vector<8x32xf32>
    %151 = vector.extract_strided_slice %145 {offsets = [0, 32], sizes = [8, 32], strides = [1, 1]} : vector<8x128xf32> to vector<8x32xf32>
    %cst_61 = arith.constant 5.000000e-01 : f32
    %152 = vector.broadcast %cst_61 : f32 to vector<8x32xf32>
    %153 = arith.mulf %151, %152 : vector<8x32xf32>
    %cst_62 = arith.constant 5.000000e-01 : f32
    %154 = vector.broadcast %cst_62 : f32 to vector<8x32xf32>
    %155 = arith.addf %153, %154 : vector<8x32xf32>
    %156 = vector.extract_strided_slice %145 {offsets = [0, 64], sizes = [8, 32], strides = [1, 1]} : vector<8x128xf32> to vector<8x32xf32>
    %157 = vector.extract_strided_slice %145 {offsets = [0, 96], sizes = [8, 32], strides = [1, 1]} : vector<8x128xf32> to vector<8x32xf32>
    %cst_63 = arith.constant 5.000000e-01 : f32
    %158 = vector.broadcast %cst_63 : f32 to vector<8x32xf32>
    %159 = arith.mulf %157, %158 : vector<8x32xf32>
    %cst_64 = arith.constant 5.000000e-01 : f32
    %160 = vector.broadcast %cst_64 : f32 to vector<8x32xf32>
    %161 = arith.addf %159, %160 : vector<8x32xf32>
    %162 = arith.mulf %155, %108 : vector<8x32xf32>
    %163 = arith.mulf %150, %156 : vector<8x32xf32>
    %164 = arith.addf %162, %163 : vector<8x32xf32>
    %165 = math.tanh %164 : vector<8x32xf32>
    %166 = arith.mulf %161, %165 : vector<8x32xf32>
    %cst_65 = arith.constant dense<0.000000e+00> : vector<8x128xf32>
    %167 = tpu.matmul %166, %8, %cst_65 {dimension_numbers = #tpu.dot_dimension_numbers<[1], [0], [0], [1], [0, 0, 1, 1], [], []>} : vector<8x32xf32>, vector<32x128xf32>, vector<8x128xf32> -> vector<8x128xf32>
    %168 = arith.addf %167, %138 : vector<8x128xf32>
    %169 = arith.addf %168, %12 : vector<8x128xf32>
    %170 = arith.mulf %169, %23 : vector<8x128xf32>
    %171 = math.tanh %170 : vector<8x128xf32>
    %172 = vector.extract_strided_slice %171 {offsets = [0, 0], sizes = [8, 32], strides = [1, 1]} : vector<8x128xf32> to vector<8x32xf32>
    %cst_66 = arith.constant 5.000000e-01 : f32
    %173 = vector.broadcast %cst_66 : f32 to vector<8x32xf32>
    %174 = arith.mulf %172, %173 : vector<8x32xf32>
    %cst_67 = arith.constant 5.000000e-01 : f32
    %175 = vector.broadcast %cst_67 : f32 to vector<8x32xf32>
    %176 = arith.addf %174, %175 : vector<8x32xf32>
    %177 = vector.extract_strided_slice %171 {offsets = [0, 32], sizes = [8, 32], strides = [1, 1]} : vector<8x128xf32> to vector<8x32xf32>
    %cst_68 = arith.constant 5.000000e-01 : f32
    %178 = vector.broadcast %cst_68 : f32 to vector<8x32xf32>
    %179 = arith.mulf %177, %178 : vector<8x32xf32>
    %cst_69 = arith.constant 5.000000e-01 : f32
    %180 = vector.broadcast %cst_69 : f32 to vector<8x32xf32>
    %181 = arith.addf %179, %180 : vector<8x32xf32>
    %182 = vector.extract_strided_slice %171 {offsets = [0, 64], sizes = [8, 32], strides = [1, 1]} : vector<8x128xf32> to vector<8x32xf32>
    %183 = vector.extract_strided_slice %171 {offsets = [0, 96], sizes = [8, 32], strides = [1, 1]} : vector<8x128xf32> to vector<8x32xf32>
    %cst_70 = arith.constant 5.000000e-01 : f32
    %184 = vector.broadcast %cst_70 : f32 to vector<8x32xf32>
    %185 = arith.mulf %183, %184 : vector<8x32xf32>
    %cst_71 = arith.constant 5.000000e-01 : f32
    %186 = vector.broadcast %cst_71 : f32 to vector<8x32xf32>
    %187 = arith.addf %185, %186 : vector<8x32xf32>
    %188 = arith.mulf %181, %134 : vector<8x32xf32>
    %189 = arith.mulf %176, %182 : vector<8x32xf32>
    %190 = arith.addf %188, %189 : vector<8x32xf32>
    %191 = math.tanh %190 : vector<8x32xf32>
    %192 = arith.mulf %187, %191 : vector<8x32xf32>
    %c3_i32 = arith.constant 3 : i32
    %cst_72 = arith.constant dense<0.000000e+00> : vector<8x128xf32>
    %193 = tpu.matmul %166, %7, %cst_72 {dimension_numbers = #tpu.dot_dimension_numbers<[1], [0], [0], [1], [0, 0, 1, 1], [], []>} : vector<8x32xf32>, vector<32x128xf32>, vector<8x128xf32> -> vector<8x128xf32>
    %cst_73 = arith.constant dense<0.000000e+00> : vector<8x128xf32>
    %194 = tpu.matmul %192, %9, %cst_73 {dimension_numbers = #tpu.dot_dimension_numbers<[1], [0], [0], [1], [0, 0, 1, 1], [], []>} : vector<8x32xf32>, vector<32x128xf32>, vector<8x128xf32> -> vector<8x128xf32>
    %c8_i32_74 = arith.constant 8 : i32
    %195 = arith.muli %c3_i32, %c8_i32_74 : i32
    %196 = tpu.assume_multiple %195, 8 : i32
    %197 = arith.index_cast %196 : i32 to index
    %c0_75 = arith.constant 0 : index
    %198 = vector.load %arg11[%197, %c0_75] : memref<64x128xf32, #tpu.memory_space<vmem>>, vector<8x128xf32>
    %199 = arith.addf %198, %193 : vector<8x128xf32>
    %200 = arith.mulf %199, %23 : vector<8x128xf32>
    %201 = math.tanh %200 : vector<8x128xf32>
    %202 = vector.extract_strided_slice %201 {offsets = [0, 0], sizes = [8, 32], strides = [1, 1]} : vector<8x128xf32> to vector<8x32xf32>
    %cst_76 = arith.constant 5.000000e-01 : f32
    %203 = vector.broadcast %cst_76 : f32 to vector<8x32xf32>
    %204 = arith.mulf %202, %203 : vector<8x32xf32>
    %cst_77 = arith.constant 5.000000e-01 : f32
    %205 = vector.broadcast %cst_77 : f32 to vector<8x32xf32>
    %206 = arith.addf %204, %205 : vector<8x32xf32>
    %207 = vector.extract_strided_slice %201 {offsets = [0, 32], sizes = [8, 32], strides = [1, 1]} : vector<8x128xf32> to vector<8x32xf32>
    %cst_78 = arith.constant 5.000000e-01 : f32
    %208 = vector.broadcast %cst_78 : f32 to vector<8x32xf32>
    %209 = arith.mulf %207, %208 : vector<8x32xf32>
    %cst_79 = arith.constant 5.000000e-01 : f32
    %210 = vector.broadcast %cst_79 : f32 to vector<8x32xf32>
    %211 = arith.addf %209, %210 : vector<8x32xf32>
    %212 = vector.extract_strided_slice %201 {offsets = [0, 64], sizes = [8, 32], strides = [1, 1]} : vector<8x128xf32> to vector<8x32xf32>
    %213 = vector.extract_strided_slice %201 {offsets = [0, 96], sizes = [8, 32], strides = [1, 1]} : vector<8x128xf32> to vector<8x32xf32>
    %cst_80 = arith.constant 5.000000e-01 : f32
    %214 = vector.broadcast %cst_80 : f32 to vector<8x32xf32>
    %215 = arith.mulf %213, %214 : vector<8x32xf32>
    %cst_81 = arith.constant 5.000000e-01 : f32
    %216 = vector.broadcast %cst_81 : f32 to vector<8x32xf32>
    %217 = arith.addf %215, %216 : vector<8x32xf32>
    %218 = arith.mulf %211, %164 : vector<8x32xf32>
    %219 = arith.mulf %206, %212 : vector<8x32xf32>
    %220 = arith.addf %218, %219 : vector<8x32xf32>
    %221 = math.tanh %220 : vector<8x32xf32>
    %222 = arith.mulf %217, %221 : vector<8x32xf32>
    %cst_82 = arith.constant dense<0.000000e+00> : vector<8x128xf32>
    %223 = tpu.matmul %222, %8, %cst_82 {dimension_numbers = #tpu.dot_dimension_numbers<[1], [0], [0], [1], [0, 0, 1, 1], [], []>} : vector<8x32xf32>, vector<32x128xf32>, vector<8x128xf32> -> vector<8x128xf32>
    %224 = arith.addf %223, %194 : vector<8x128xf32>
    %225 = arith.addf %224, %12 : vector<8x128xf32>
    %226 = arith.mulf %225, %23 : vector<8x128xf32>
    %227 = math.tanh %226 : vector<8x128xf32>
    %228 = vector.extract_strided_slice %227 {offsets = [0, 0], sizes = [8, 32], strides = [1, 1]} : vector<8x128xf32> to vector<8x32xf32>
    %cst_83 = arith.constant 5.000000e-01 : f32
    %229 = vector.broadcast %cst_83 : f32 to vector<8x32xf32>
    %230 = arith.mulf %228, %229 : vector<8x32xf32>
    %cst_84 = arith.constant 5.000000e-01 : f32
    %231 = vector.broadcast %cst_84 : f32 to vector<8x32xf32>
    %232 = arith.addf %230, %231 : vector<8x32xf32>
    %233 = vector.extract_strided_slice %227 {offsets = [0, 32], sizes = [8, 32], strides = [1, 1]} : vector<8x128xf32> to vector<8x32xf32>
    %cst_85 = arith.constant 5.000000e-01 : f32
    %234 = vector.broadcast %cst_85 : f32 to vector<8x32xf32>
    %235 = arith.mulf %233, %234 : vector<8x32xf32>
    %cst_86 = arith.constant 5.000000e-01 : f32
    %236 = vector.broadcast %cst_86 : f32 to vector<8x32xf32>
    %237 = arith.addf %235, %236 : vector<8x32xf32>
    %238 = vector.extract_strided_slice %227 {offsets = [0, 64], sizes = [8, 32], strides = [1, 1]} : vector<8x128xf32> to vector<8x32xf32>
    %239 = vector.extract_strided_slice %227 {offsets = [0, 96], sizes = [8, 32], strides = [1, 1]} : vector<8x128xf32> to vector<8x32xf32>
    %cst_87 = arith.constant 5.000000e-01 : f32
    %240 = vector.broadcast %cst_87 : f32 to vector<8x32xf32>
    %241 = arith.mulf %239, %240 : vector<8x32xf32>
    %cst_88 = arith.constant 5.000000e-01 : f32
    %242 = vector.broadcast %cst_88 : f32 to vector<8x32xf32>
    %243 = arith.addf %241, %242 : vector<8x32xf32>
    %244 = arith.mulf %237, %190 : vector<8x32xf32>
    %245 = arith.mulf %232, %238 : vector<8x32xf32>
    %246 = arith.addf %244, %245 : vector<8x32xf32>
    %247 = math.tanh %246 : vector<8x32xf32>
    %248 = arith.mulf %243, %247 : vector<8x32xf32>
    %c4_i32 = arith.constant 4 : i32
    %cst_89 = arith.constant dense<0.000000e+00> : vector<8x128xf32>
    %249 = tpu.matmul %222, %7, %cst_89 {dimension_numbers = #tpu.dot_dimension_numbers<[1], [0], [0], [1], [0, 0, 1, 1], [], []>} : vector<8x32xf32>, vector<32x128xf32>, vector<8x128xf32> -> vector<8x128xf32>
    %cst_90 = arith.constant dense<0.000000e+00> : vector<8x128xf32>
    %250 = tpu.matmul %248, %9, %cst_90 {dimension_numbers = #tpu.dot_dimension_numbers<[1], [0], [0], [1], [0, 0, 1, 1], [], []>} : vector<8x32xf32>, vector<32x128xf32>, vector<8x128xf32> -> vector<8x128xf32>
    %c8_i32_91 = arith.constant 8 : i32
    %251 = arith.muli %c4_i32, %c8_i32_91 : i32
    %252 = tpu.assume_multiple %251, 8 : i32
    %253 = arith.index_cast %252 : i32 to index
    %c0_92 = arith.constant 0 : index
    %254 = vector.load %arg11[%253, %c0_92] : memref<64x128xf32, #tpu.memory_space<vmem>>, vector<8x128xf32>
    %255 = arith.addf %254, %249 : vector<8x128xf32>
    %256 = arith.mulf %255, %23 : vector<8x128xf32>
    %257 = math.tanh %256 : vector<8x128xf32>
    %258 = vector.extract_strided_slice %257 {offsets = [0, 0], sizes = [8, 32], strides = [1, 1]} : vector<8x128xf32> to vector<8x32xf32>
    %cst_93 = arith.constant 5.000000e-01 : f32
    %259 = vector.broadcast %cst_93 : f32 to vector<8x32xf32>
    %260 = arith.mulf %258, %259 : vector<8x32xf32>
    %cst_94 = arith.constant 5.000000e-01 : f32
    %261 = vector.broadcast %cst_94 : f32 to vector<8x32xf32>
    %262 = arith.addf %260, %261 : vector<8x32xf32>
    %263 = vector.extract_strided_slice %257 {offsets = [0, 32], sizes = [8, 32], strides = [1, 1]} : vector<8x128xf32> to vector<8x32xf32>
    %cst_95 = arith.constant 5.000000e-01 : f32
    %264 = vector.broadcast %cst_95 : f32 to vector<8x32xf32>
    %265 = arith.mulf %263, %264 : vector<8x32xf32>
    %cst_96 = arith.constant 5.000000e-01 : f32
    %266 = vector.broadcast %cst_96 : f32 to vector<8x32xf32>
    %267 = arith.addf %265, %266 : vector<8x32xf32>
    %268 = vector.extract_strided_slice %257 {offsets = [0, 64], sizes = [8, 32], strides = [1, 1]} : vector<8x128xf32> to vector<8x32xf32>
    %269 = vector.extract_strided_slice %257 {offsets = [0, 96], sizes = [8, 32], strides = [1, 1]} : vector<8x128xf32> to vector<8x32xf32>
    %cst_97 = arith.constant 5.000000e-01 : f32
    %270 = vector.broadcast %cst_97 : f32 to vector<8x32xf32>
    %271 = arith.mulf %269, %270 : vector<8x32xf32>
    %cst_98 = arith.constant 5.000000e-01 : f32
    %272 = vector.broadcast %cst_98 : f32 to vector<8x32xf32>
    %273 = arith.addf %271, %272 : vector<8x32xf32>
    %274 = arith.mulf %267, %220 : vector<8x32xf32>
    %275 = arith.mulf %262, %268 : vector<8x32xf32>
    %276 = arith.addf %274, %275 : vector<8x32xf32>
    %277 = math.tanh %276 : vector<8x32xf32>
    %278 = arith.mulf %273, %277 : vector<8x32xf32>
    %cst_99 = arith.constant dense<0.000000e+00> : vector<8x128xf32>
    %279 = tpu.matmul %278, %8, %cst_99 {dimension_numbers = #tpu.dot_dimension_numbers<[1], [0], [0], [1], [0, 0, 1, 1], [], []>} : vector<8x32xf32>, vector<32x128xf32>, vector<8x128xf32> -> vector<8x128xf32>
    %280 = arith.addf %279, %250 : vector<8x128xf32>
    %281 = arith.addf %280, %12 : vector<8x128xf32>
    %282 = arith.mulf %281, %23 : vector<8x128xf32>
    %283 = math.tanh %282 : vector<8x128xf32>
    %284 = vector.extract_strided_slice %283 {offsets = [0, 0], sizes = [8, 32], strides = [1, 1]} : vector<8x128xf32> to vector<8x32xf32>
    %cst_100 = arith.constant 5.000000e-01 : f32
    %285 = vector.broadcast %cst_100 : f32 to vector<8x32xf32>
    %286 = arith.mulf %284, %285 : vector<8x32xf32>
    %cst_101 = arith.constant 5.000000e-01 : f32
    %287 = vector.broadcast %cst_101 : f32 to vector<8x32xf32>
    %288 = arith.addf %286, %287 : vector<8x32xf32>
    %289 = vector.extract_strided_slice %283 {offsets = [0, 32], sizes = [8, 32], strides = [1, 1]} : vector<8x128xf32> to vector<8x32xf32>
    %cst_102 = arith.constant 5.000000e-01 : f32
    %290 = vector.broadcast %cst_102 : f32 to vector<8x32xf32>
    %291 = arith.mulf %289, %290 : vector<8x32xf32>
    %cst_103 = arith.constant 5.000000e-01 : f32
    %292 = vector.broadcast %cst_103 : f32 to vector<8x32xf32>
    %293 = arith.addf %291, %292 : vector<8x32xf32>
    %294 = vector.extract_strided_slice %283 {offsets = [0, 64], sizes = [8, 32], strides = [1, 1]} : vector<8x128xf32> to vector<8x32xf32>
    %295 = vector.extract_strided_slice %283 {offsets = [0, 96], sizes = [8, 32], strides = [1, 1]} : vector<8x128xf32> to vector<8x32xf32>
    %cst_104 = arith.constant 5.000000e-01 : f32
    %296 = vector.broadcast %cst_104 : f32 to vector<8x32xf32>
    %297 = arith.mulf %295, %296 : vector<8x32xf32>
    %cst_105 = arith.constant 5.000000e-01 : f32
    %298 = vector.broadcast %cst_105 : f32 to vector<8x32xf32>
    %299 = arith.addf %297, %298 : vector<8x32xf32>
    %300 = arith.mulf %293, %246 : vector<8x32xf32>
    %301 = arith.mulf %288, %294 : vector<8x32xf32>
    %302 = arith.addf %300, %301 : vector<8x32xf32>
    %303 = math.tanh %302 : vector<8x32xf32>
    %304 = arith.mulf %299, %303 : vector<8x32xf32>
    %c5_i32 = arith.constant 5 : i32
    %cst_106 = arith.constant dense<0.000000e+00> : vector<8x128xf32>
    %305 = tpu.matmul %278, %7, %cst_106 {dimension_numbers = #tpu.dot_dimension_numbers<[1], [0], [0], [1], [0, 0, 1, 1], [], []>} : vector<8x32xf32>, vector<32x128xf32>, vector<8x128xf32> -> vector<8x128xf32>
    %cst_107 = arith.constant dense<0.000000e+00> : vector<8x128xf32>
    %306 = tpu.matmul %304, %9, %cst_107 {dimension_numbers = #tpu.dot_dimension_numbers<[1], [0], [0], [1], [0, 0, 1, 1], [], []>} : vector<8x32xf32>, vector<32x128xf32>, vector<8x128xf32> -> vector<8x128xf32>
    %c8_i32_108 = arith.constant 8 : i32
    %307 = arith.muli %c5_i32, %c8_i32_108 : i32
    %308 = tpu.assume_multiple %307, 8 : i32
    %309 = arith.index_cast %308 : i32 to index
    %c0_109 = arith.constant 0 : index
    %310 = vector.load %arg11[%309, %c0_109] : memref<64x128xf32, #tpu.memory_space<vmem>>, vector<8x128xf32>
    %311 = arith.addf %310, %305 : vector<8x128xf32>
    %312 = arith.mulf %311, %23 : vector<8x128xf32>
    %313 = math.tanh %312 : vector<8x128xf32>
    %314 = vector.extract_strided_slice %313 {offsets = [0, 0], sizes = [8, 32], strides = [1, 1]} : vector<8x128xf32> to vector<8x32xf32>
    %cst_110 = arith.constant 5.000000e-01 : f32
    %315 = vector.broadcast %cst_110 : f32 to vector<8x32xf32>
    %316 = arith.mulf %314, %315 : vector<8x32xf32>
    %cst_111 = arith.constant 5.000000e-01 : f32
    %317 = vector.broadcast %cst_111 : f32 to vector<8x32xf32>
    %318 = arith.addf %316, %317 : vector<8x32xf32>
    %319 = vector.extract_strided_slice %313 {offsets = [0, 32], sizes = [8, 32], strides = [1, 1]} : vector<8x128xf32> to vector<8x32xf32>
    %cst_112 = arith.constant 5.000000e-01 : f32
    %320 = vector.broadcast %cst_112 : f32 to vector<8x32xf32>
    %321 = arith.mulf %319, %320 : vector<8x32xf32>
    %cst_113 = arith.constant 5.000000e-01 : f32
    %322 = vector.broadcast %cst_113 : f32 to vector<8x32xf32>
    %323 = arith.addf %321, %322 : vector<8x32xf32>
    %324 = vector.extract_strided_slice %313 {offsets = [0, 64], sizes = [8, 32], strides = [1, 1]} : vector<8x128xf32> to vector<8x32xf32>
    %325 = vector.extract_strided_slice %313 {offsets = [0, 96], sizes = [8, 32], strides = [1, 1]} : vector<8x128xf32> to vector<8x32xf32>
    %cst_114 = arith.constant 5.000000e-01 : f32
    %326 = vector.broadcast %cst_114 : f32 to vector<8x32xf32>
    %327 = arith.mulf %325, %326 : vector<8x32xf32>
    %cst_115 = arith.constant 5.000000e-01 : f32
    %328 = vector.broadcast %cst_115 : f32 to vector<8x32xf32>
    %329 = arith.addf %327, %328 : vector<8x32xf32>
    %330 = arith.mulf %323, %276 : vector<8x32xf32>
    %331 = arith.mulf %318, %324 : vector<8x32xf32>
    %332 = arith.addf %330, %331 : vector<8x32xf32>
    %333 = math.tanh %332 : vector<8x32xf32>
    %334 = arith.mulf %329, %333 : vector<8x32xf32>
    %cst_116 = arith.constant dense<0.000000e+00> : vector<8x128xf32>
    %335 = tpu.matmul %334, %8, %cst_116 {dimension_numbers = #tpu.dot_dimension_numbers<[1], [0], [0], [1], [0, 0, 1, 1], [], []>} : vector<8x32xf32>, vector<32x128xf32>, vector<8x128xf32> -> vector<8x128xf32>
    %336 = arith.addf %335, %306 : vector<8x128xf32>
    %337 = arith.addf %336, %12 : vector<8x128xf32>
    %338 = arith.mulf %337, %23 : vector<8x128xf32>
    %339 = math.tanh %338 : vector<8x128xf32>
    %340 = vector.extract_strided_slice %339 {offsets = [0, 0], sizes = [8, 32], strides = [1, 1]} : vector<8x128xf32> to vector<8x32xf32>
    %cst_117 = arith.constant 5.000000e-01 : f32
    %341 = vector.broadcast %cst_117 : f32 to vector<8x32xf32>
    %342 = arith.mulf %340, %341 : vector<8x32xf32>
    %cst_118 = arith.constant 5.000000e-01 : f32
    %343 = vector.broadcast %cst_118 : f32 to vector<8x32xf32>
    %344 = arith.addf %342, %343 : vector<8x32xf32>
    %345 = vector.extract_strided_slice %339 {offsets = [0, 32], sizes = [8, 32], strides = [1, 1]} : vector<8x128xf32> to vector<8x32xf32>
    %cst_119 = arith.constant 5.000000e-01 : f32
    %346 = vector.broadcast %cst_119 : f32 to vector<8x32xf32>
    %347 = arith.mulf %345, %346 : vector<8x32xf32>
    %cst_120 = arith.constant 5.000000e-01 : f32
    %348 = vector.broadcast %cst_120 : f32 to vector<8x32xf32>
    %349 = arith.addf %347, %348 : vector<8x32xf32>
    %350 = vector.extract_strided_slice %339 {offsets = [0, 64], sizes = [8, 32], strides = [1, 1]} : vector<8x128xf32> to vector<8x32xf32>
    %351 = vector.extract_strided_slice %339 {offsets = [0, 96], sizes = [8, 32], strides = [1, 1]} : vector<8x128xf32> to vector<8x32xf32>
    %cst_121 = arith.constant 5.000000e-01 : f32
    %352 = vector.broadcast %cst_121 : f32 to vector<8x32xf32>
    %353 = arith.mulf %351, %352 : vector<8x32xf32>
    %cst_122 = arith.constant 5.000000e-01 : f32
    %354 = vector.broadcast %cst_122 : f32 to vector<8x32xf32>
    %355 = arith.addf %353, %354 : vector<8x32xf32>
    %356 = arith.mulf %349, %302 : vector<8x32xf32>
    %357 = arith.mulf %344, %350 : vector<8x32xf32>
    %358 = arith.addf %356, %357 : vector<8x32xf32>
    %359 = math.tanh %358 : vector<8x32xf32>
    %360 = arith.mulf %355, %359 : vector<8x32xf32>
    %c6_i32 = arith.constant 6 : i32
    %cst_123 = arith.constant dense<0.000000e+00> : vector<8x128xf32>
    %361 = tpu.matmul %334, %7, %cst_123 {dimension_numbers = #tpu.dot_dimension_numbers<[1], [0], [0], [1], [0, 0, 1, 1], [], []>} : vector<8x32xf32>, vector<32x128xf32>, vector<8x128xf32> -> vector<8x128xf32>
    %cst_124 = arith.constant dense<0.000000e+00> : vector<8x128xf32>
    %362 = tpu.matmul %360, %9, %cst_124 {dimension_numbers = #tpu.dot_dimension_numbers<[1], [0], [0], [1], [0, 0, 1, 1], [], []>} : vector<8x32xf32>, vector<32x128xf32>, vector<8x128xf32> -> vector<8x128xf32>
    %c8_i32_125 = arith.constant 8 : i32
    %363 = arith.muli %c6_i32, %c8_i32_125 : i32
    %364 = tpu.assume_multiple %363, 8 : i32
    %365 = arith.index_cast %364 : i32 to index
    %c0_126 = arith.constant 0 : index
    %366 = vector.load %arg11[%365, %c0_126] : memref<64x128xf32, #tpu.memory_space<vmem>>, vector<8x128xf32>
    %367 = arith.addf %366, %361 : vector<8x128xf32>
    %368 = arith.mulf %367, %23 : vector<8x128xf32>
    %369 = math.tanh %368 : vector<8x128xf32>
    %370 = vector.extract_strided_slice %369 {offsets = [0, 0], sizes = [8, 32], strides = [1, 1]} : vector<8x128xf32> to vector<8x32xf32>
    %cst_127 = arith.constant 5.000000e-01 : f32
    %371 = vector.broadcast %cst_127 : f32 to vector<8x32xf32>
    %372 = arith.mulf %370, %371 : vector<8x32xf32>
    %cst_128 = arith.constant 5.000000e-01 : f32
    %373 = vector.broadcast %cst_128 : f32 to vector<8x32xf32>
    %374 = arith.addf %372, %373 : vector<8x32xf32>
    %375 = vector.extract_strided_slice %369 {offsets = [0, 32], sizes = [8, 32], strides = [1, 1]} : vector<8x128xf32> to vector<8x32xf32>
    %cst_129 = arith.constant 5.000000e-01 : f32
    %376 = vector.broadcast %cst_129 : f32 to vector<8x32xf32>
    %377 = arith.mulf %375, %376 : vector<8x32xf32>
    %cst_130 = arith.constant 5.000000e-01 : f32
    %378 = vector.broadcast %cst_130 : f32 to vector<8x32xf32>
    %379 = arith.addf %377, %378 : vector<8x32xf32>
    %380 = vector.extract_strided_slice %369 {offsets = [0, 64], sizes = [8, 32], strides = [1, 1]} : vector<8x128xf32> to vector<8x32xf32>
    %381 = vector.extract_strided_slice %369 {offsets = [0, 96], sizes = [8, 32], strides = [1, 1]} : vector<8x128xf32> to vector<8x32xf32>
    %cst_131 = arith.constant 5.000000e-01 : f32
    %382 = vector.broadcast %cst_131 : f32 to vector<8x32xf32>
    %383 = arith.mulf %381, %382 : vector<8x32xf32>
    %cst_132 = arith.constant 5.000000e-01 : f32
    %384 = vector.broadcast %cst_132 : f32 to vector<8x32xf32>
    %385 = arith.addf %383, %384 : vector<8x32xf32>
    %386 = arith.mulf %379, %332 : vector<8x32xf32>
    %387 = arith.mulf %374, %380 : vector<8x32xf32>
    %388 = arith.addf %386, %387 : vector<8x32xf32>
    %389 = math.tanh %388 : vector<8x32xf32>
    %390 = arith.mulf %385, %389 : vector<8x32xf32>
    %cst_133 = arith.constant dense<0.000000e+00> : vector<8x128xf32>
    %391 = tpu.matmul %390, %8, %cst_133 {dimension_numbers = #tpu.dot_dimension_numbers<[1], [0], [0], [1], [0, 0, 1, 1], [], []>} : vector<8x32xf32>, vector<32x128xf32>, vector<8x128xf32> -> vector<8x128xf32>
    %392 = arith.addf %391, %362 : vector<8x128xf32>
    %393 = arith.addf %392, %12 : vector<8x128xf32>
    %394 = arith.mulf %393, %23 : vector<8x128xf32>
    %395 = math.tanh %394 : vector<8x128xf32>
    %396 = vector.extract_strided_slice %395 {offsets = [0, 0], sizes = [8, 32], strides = [1, 1]} : vector<8x128xf32> to vector<8x32xf32>
    %cst_134 = arith.constant 5.000000e-01 : f32
    %397 = vector.broadcast %cst_134 : f32 to vector<8x32xf32>
    %398 = arith.mulf %396, %397 : vector<8x32xf32>
    %cst_135 = arith.constant 5.000000e-01 : f32
    %399 = vector.broadcast %cst_135 : f32 to vector<8x32xf32>
    %400 = arith.addf %398, %399 : vector<8x32xf32>
    %401 = vector.extract_strided_slice %395 {offsets = [0, 32], sizes = [8, 32], strides = [1, 1]} : vector<8x128xf32> to vector<8x32xf32>
    %cst_136 = arith.constant 5.000000e-01 : f32
    %402 = vector.broadcast %cst_136 : f32 to vector<8x32xf32>
    %403 = arith.mulf %401, %402 : vector<8x32xf32>
    %cst_137 = arith.constant 5.000000e-01 : f32
    %404 = vector.broadcast %cst_137 : f32 to vector<8x32xf32>
    %405 = arith.addf %403, %404 : vector<8x32xf32>
    %406 = vector.extract_strided_slice %395 {offsets = [0, 64], sizes = [8, 32], strides = [1, 1]} : vector<8x128xf32> to vector<8x32xf32>
    %407 = vector.extract_strided_slice %395 {offsets = [0, 96], sizes = [8, 32], strides = [1, 1]} : vector<8x128xf32> to vector<8x32xf32>
    %cst_138 = arith.constant 5.000000e-01 : f32
    %408 = vector.broadcast %cst_138 : f32 to vector<8x32xf32>
    %409 = arith.mulf %407, %408 : vector<8x32xf32>
    %cst_139 = arith.constant 5.000000e-01 : f32
    %410 = vector.broadcast %cst_139 : f32 to vector<8x32xf32>
    %411 = arith.addf %409, %410 : vector<8x32xf32>
    %412 = arith.mulf %405, %358 : vector<8x32xf32>
    %413 = arith.mulf %400, %406 : vector<8x32xf32>
    %414 = arith.addf %412, %413 : vector<8x32xf32>
    %415 = math.tanh %414 : vector<8x32xf32>
    %416 = arith.mulf %411, %415 : vector<8x32xf32>
    %c7_i32 = arith.constant 7 : i32
    %cst_140 = arith.constant dense<0.000000e+00> : vector<8x128xf32>
    %417 = tpu.matmul %390, %7, %cst_140 {dimension_numbers = #tpu.dot_dimension_numbers<[1], [0], [0], [1], [0, 0, 1, 1], [], []>} : vector<8x32xf32>, vector<32x128xf32>, vector<8x128xf32> -> vector<8x128xf32>
    %cst_141 = arith.constant dense<0.000000e+00> : vector<8x128xf32>
    %418 = tpu.matmul %416, %9, %cst_141 {dimension_numbers = #tpu.dot_dimension_numbers<[1], [0], [0], [1], [0, 0, 1, 1], [], []>} : vector<8x32xf32>, vector<32x128xf32>, vector<8x128xf32> -> vector<8x128xf32>
    %c8_i32_142 = arith.constant 8 : i32
    %419 = arith.muli %c7_i32, %c8_i32_142 : i32
    %420 = tpu.assume_multiple %419, 8 : i32
    %421 = arith.index_cast %420 : i32 to index
    %c0_143 = arith.constant 0 : index
    %422 = vector.load %arg11[%421, %c0_143] : memref<64x128xf32, #tpu.memory_space<vmem>>, vector<8x128xf32>
    %423 = arith.addf %422, %417 : vector<8x128xf32>
    %424 = arith.mulf %423, %23 : vector<8x128xf32>
    %425 = math.tanh %424 : vector<8x128xf32>
    %426 = vector.extract_strided_slice %425 {offsets = [0, 0], sizes = [8, 32], strides = [1, 1]} : vector<8x128xf32> to vector<8x32xf32>
    %cst_144 = arith.constant 5.000000e-01 : f32
    %427 = vector.broadcast %cst_144 : f32 to vector<8x32xf32>
    %428 = arith.mulf %426, %427 : vector<8x32xf32>
    %cst_145 = arith.constant 5.000000e-01 : f32
    %429 = vector.broadcast %cst_145 : f32 to vector<8x32xf32>
    %430 = arith.addf %428, %429 : vector<8x32xf32>
    %431 = vector.extract_strided_slice %425 {offsets = [0, 32], sizes = [8, 32], strides = [1, 1]} : vector<8x128xf32> to vector<8x32xf32>
    %cst_146 = arith.constant 5.000000e-01 : f32
    %432 = vector.broadcast %cst_146 : f32 to vector<8x32xf32>
    %433 = arith.mulf %431, %432 : vector<8x32xf32>
    %cst_147 = arith.constant 5.000000e-01 : f32
    %434 = vector.broadcast %cst_147 : f32 to vector<8x32xf32>
    %435 = arith.addf %433, %434 : vector<8x32xf32>
    %436 = vector.extract_strided_slice %425 {offsets = [0, 64], sizes = [8, 32], strides = [1, 1]} : vector<8x128xf32> to vector<8x32xf32>
    %437 = vector.extract_strided_slice %425 {offsets = [0, 96], sizes = [8, 32], strides = [1, 1]} : vector<8x128xf32> to vector<8x32xf32>
    %cst_148 = arith.constant 5.000000e-01 : f32
    %438 = vector.broadcast %cst_148 : f32 to vector<8x32xf32>
    %439 = arith.mulf %437, %438 : vector<8x32xf32>
    %cst_149 = arith.constant 5.000000e-01 : f32
    %440 = vector.broadcast %cst_149 : f32 to vector<8x32xf32>
    %441 = arith.addf %439, %440 : vector<8x32xf32>
    %442 = arith.mulf %435, %388 : vector<8x32xf32>
    %443 = arith.mulf %430, %436 : vector<8x32xf32>
    %444 = arith.addf %442, %443 : vector<8x32xf32>
    %445 = math.tanh %444 : vector<8x32xf32>
    %446 = arith.mulf %441, %445 : vector<8x32xf32>
    %cst_150 = arith.constant dense<0.000000e+00> : vector<8x128xf32>
    %447 = tpu.matmul %446, %8, %cst_150 {dimension_numbers = #tpu.dot_dimension_numbers<[1], [0], [0], [1], [0, 0, 1, 1], [], []>} : vector<8x32xf32>, vector<32x128xf32>, vector<8x128xf32> -> vector<8x128xf32>
    %448 = arith.addf %447, %418 : vector<8x128xf32>
    %449 = arith.addf %448, %12 : vector<8x128xf32>
    %450 = arith.mulf %449, %23 : vector<8x128xf32>
    %451 = math.tanh %450 : vector<8x128xf32>
    %452 = vector.extract_strided_slice %451 {offsets = [0, 0], sizes = [8, 32], strides = [1, 1]} : vector<8x128xf32> to vector<8x32xf32>
    %cst_151 = arith.constant 5.000000e-01 : f32
    %453 = vector.broadcast %cst_151 : f32 to vector<8x32xf32>
    %454 = arith.mulf %452, %453 : vector<8x32xf32>
    %cst_152 = arith.constant 5.000000e-01 : f32
    %455 = vector.broadcast %cst_152 : f32 to vector<8x32xf32>
    %456 = arith.addf %454, %455 : vector<8x32xf32>
    %457 = vector.extract_strided_slice %451 {offsets = [0, 32], sizes = [8, 32], strides = [1, 1]} : vector<8x128xf32> to vector<8x32xf32>
    %cst_153 = arith.constant 5.000000e-01 : f32
    %458 = vector.broadcast %cst_153 : f32 to vector<8x32xf32>
    %459 = arith.mulf %457, %458 : vector<8x32xf32>
    %cst_154 = arith.constant 5.000000e-01 : f32
    %460 = vector.broadcast %cst_154 : f32 to vector<8x32xf32>
    %461 = arith.addf %459, %460 : vector<8x32xf32>
    %462 = vector.extract_strided_slice %451 {offsets = [0, 64], sizes = [8, 32], strides = [1, 1]} : vector<8x128xf32> to vector<8x32xf32>
    %463 = vector.extract_strided_slice %451 {offsets = [0, 96], sizes = [8, 32], strides = [1, 1]} : vector<8x128xf32> to vector<8x32xf32>
    %cst_155 = arith.constant 5.000000e-01 : f32
    %464 = vector.broadcast %cst_155 : f32 to vector<8x32xf32>
    %465 = arith.mulf %463, %464 : vector<8x32xf32>
    %cst_156 = arith.constant 5.000000e-01 : f32
    %466 = vector.broadcast %cst_156 : f32 to vector<8x32xf32>
    %467 = arith.addf %465, %466 : vector<8x32xf32>
    %468 = arith.mulf %461, %414 : vector<8x32xf32>
    %469 = arith.mulf %456, %462 : vector<8x32xf32>
    %470 = arith.addf %468, %469 : vector<8x32xf32>
    %471 = math.tanh %470 : vector<8x32xf32>
    %472 = arith.mulf %467, %471 : vector<8x32xf32>
    %c8_i32_157 = arith.constant 8 : i32
    %473 = vector.broadcast %13 : vector<1x32xf32> to vector<8x32xf32>
    %474 = arith.mulf %472, %473 : vector<8x32xf32>
    %cst_158 = arith.constant dense<0.000000e+00> : vector<8xf32>
    %475 = vector.multi_reduction <add>, %474, %cst_158 [1] : vector<8x32xf32> to vector<8xf32>
    %476 = vector.shape_cast %475 : vector<8xf32> to vector<8x1xf32>
    %477 = vector.broadcast %14 : vector<1x1xf32> to vector<8x1xf32>
    %478 = arith.addf %476, %477 : vector<8x1xf32>
    %c0_159 = arith.constant 0 : index
    %c0_160 = arith.constant 0 : index
    %479 = vector.load %arg10[%c0_159, %c0_160] : memref<8x1xf32, #tpu.memory_space<vmem>>, vector<8x1xf32>
    tpu.vector_store %arg10[%c0_159, %c0_160], %478 {strides = array<i32>} : memref<8x1xf32, #tpu.memory_space<vmem>>, vector<8x1xf32>,
    return
  }
  func.func @transform_0(%arg0: i32) -> (i32, i32) {
    %c0_i32 = arith.constant 0 : i32
    %c0_i32_0 = arith.constant 0 : i32
    %c0_i32_1 = arith.constant 0 : i32
    return %c0_i32, %c0_i32_0 : i32, i32
  }
  func.func @transform_1(%arg0: i32) -> (i32, i32) {
    %c0_i32 = arith.constant 0 : i32
    %c0_i32_0 = arith.constant 0 : i32
    %c0_i32_1 = arith.constant 0 : i32
    return %c0_i32, %c0_i32_0 : i32, i32
  }
  func.func @transform_2(%arg0: i32) -> (i32, i32) {
    %c0_i32 = arith.constant 0 : i32
    %c0_i32_0 = arith.constant 0 : i32
    %c0_i32_1 = arith.constant 0 : i32
    return %c0_i32, %c0_i32_0 : i32, i32
  }
  func.func @transform_3(%arg0: i32) -> (i32, i32) {
    %c0_i32 = arith.constant 0 : i32
    %c0_i32_0 = arith.constant 0 : i32
    %c0_i32_1 = arith.constant 0 : i32
    return %c0_i32, %c0_i32_0 : i32, i32
  }
  func.func @transform_4(%arg0: i32) -> (i32, i32) {
    %c0_i32 = arith.constant 0 : i32
    %c0_i32_0 = arith.constant 0 : i32
    %c0_i32_1 = arith.constant 0 : i32
    return %c0_i32, %c0_i32_0 : i32, i32
  }
  func.func @transform_5(%arg0: i32) -> (i32, i32) {
    %c0_i32 = arith.constant 0 : i32
    %c0_i32_0 = arith.constant 0 : i32
    %c0_i32_1 = arith.constant 0 : i32
    return %c0_i32, %c0_i32_0 : i32, i32
  }
  func.func @transform_6(%arg0: i32) -> (i32, i32) {
    %c0_i32 = arith.constant 0 : i32
    %c0_i32_0 = arith.constant 0 : i32
    %c0_i32_1 = arith.constant 0 : i32
    return %c0_i32, %c0_i32_0 : i32, i32
  }
  func.func @transform_7(%arg0: i32) -> (i32, i32) {
    %c0_i32 = arith.constant 0 : i32
    %c0_i32_0 = arith.constant 0 : i32
    %c0_i32_1 = arith.constant 0 : i32
    return %c0_i32, %c0_i32_0 : i32, i32
  }
  func.func @transform_8(%arg0: i32) -> (i32, i32) {
    %c0_i32 = arith.constant 0 : i32
    %c0_i32_0 = arith.constant 0 : i32
    %c0_i32_1 = arith.constant 0 : i32
    return %c0_i32, %c0_i32_0 : i32, i32
  }
  func.func @transform_9(%arg0: i32) -> (i32, i32) {
    %c0_i32 = arith.constant 0 : i32
    %c0_i32_0 = arith.constant 0 : i32
    %c0_i32_1 = arith.constant 0 : i32
    return %c0_i32, %c0_i32_0 : i32, i32
  }
}

</mosaic_0001>

<bundles_post_ra>
// kernel: lstm_forward.1
= control target key start
LH: loop header
LB: loop body
LE: loop exit
PB: predicated region body
PF: predicated region fallthrough
CT: control target
= control target key end

     0   :  { %v2898_v0 = vmov 0.0   ;;  %vm2899_vm0 = vmmov 0   ;;  %vm51_vm1 = vcmask 130048   ;;  %v210_v9 = vlaneseq  ;;  %s2901_s26 = smov 64   ;;  %s2902_s27 = smov 32   ;;  %s3533_s1 = inlined_call_operand.vmem [shape: f32[16,128], index: 1, kind: input, shape index: {}]   ;;  %s3534_s3 = inlined_call_operand.vmem [shape: f32[32,128], index: 3, kind: input, shape index: {}]   ;;  %s3535_s0 = inlined_call_operand.vmem [shape: f32[64,16], index: 0, kind: input, shape index: {}]   ;;  %s3536_s2 = inlined_call_operand.vmem [shape: f32[1,128], index: 2, kind: input, shape index: {}]   ;;  %s3537_s4 = inlined_call_operand.vmem [shape: f32[32,128], index: 4, kind: input, shape index: {}]   ;;  %s3538_s5 = inlined_call_operand.vmem [shape: f32[32,128], index: 5, kind: input, shape index: {}]   ;;  %s3539_s6 = inlined_call_operand.vmem [shape: f32[1,128], index: 6, kind: input, shape index: {}]   ;;  %s3540_s7 = inlined_call_operand.vmem [shape: f32[1,32], index: 7, kind: input, shape index: {}]   ;;  %s3541_s8 = inlined_call_operand.<no memory space> [shape: f32[1,1], index: 8, kind: input, shape index: {}]   ;;  %s3542_s9 = inlined_call_operand.vmem [shape: f32[8,1], index: 9, kind: output, shape index: {}]  }
   0x1   :  { %2551 = vmatprep.subr.mxu1 %v2898_v0  ;;  %v43_v1 = vld [vmem:[%s3533_s1 + $0x8] sm:$0xff]  ;;  %v2961_v2 = vld [vmem:[%s3534_s3 + $0x18] sm:$0xff]  ;;  %v42_v3 = vld [vmem:[%s3533_s1] sm:$0xff]  ;;  %2559 = vmatprep.mubr.msk.f32.mxu1 %vm2899_vm0, %v2898_v0  ;;  %v2900_v15 = vmov 0.5   ;;  %vm216_vm5 = vcmask 261120   ;;  %s2903_s1 = smov 96  }
   0x2   :  { %2535 = vmatprep.subr.mxu0 %v43_v1  ;;  %2552 = vmatpush3.msra.mxu1 %v2961_v2  ;;  %v2972_v4 = vld [vmem:[%s3534_s3 + $0x10] sm:$0xff]  ;;  %v34_v5 = vld [vmem:[%s3535_s0] sm:$0xff]  ;;  %v35_v6 = vld [vmem:[%s3535_s0 + $0x8] sm:$0xff]  ;;  %v211_v10 = vand.u32 127, %v210_v9  ;;  %vm2365_vm6 = vcmask 7168  }
   0x3   :  { %2536 = vmatpush3.msra.mxu0 %v43_v1  ;;  %2553 = vmatprep.subr.mxu1 %v2898_v0  ;;  %v2985_v7 = vld [vmem:[%s3534_s3 + $0x8] sm:$0xff]  ;;  %v2993_v8 = vld [vmem:[%s3534_s3] sm:$0xff]  ;;  %v36_v29 = vld [vmem:[%s3535_s0 + $0x10] sm:$0xff] }
   0x4   :  { %2537 = vmatprep.subr.mxu0 %v42_v3  ;;  %2554 = vmatpush3.msra.mxu1 %v2972_v4  ;;  %vm212_vm2 = vcmp.ge.s32.totalorder %v211_v10, 64  ;;  %vm213_vm3 = vcmp.lt.s32.totalorder %v211_v10, 96  ;;  %v3008_v12 = vld [vmem:[%s3536_s2] ss:$0 sm:$0xff]  ;;  %v37_v30 = vld [vmem:[%s3535_s0 + $0x18] sm:$0xff]  ;;  %v3039_v33 = vld [vmem:[%s3538_s5 + $0x10] sm:$0xff] }
   0x5   :  { %2538 = vmatpush3.msra.mxu0 %v42_v3  ;;  %2539 = vmatprep.mubr.msk.f32.mxu0 %vm51_vm1, %v34_v5  ;;  %vm214_vm4 = vmand %vm212_vm2, %vm213_vm3  ;;  %v3028_v31 = vld [vmem:[%s3537_s4 + $0x18] sm:$0xff]  ;;  %v3046_v34 = vld [vmem:[%s3537_s4 + $0x10] sm:$0xff] }
   0x6   :  { %2555 = vmatprep.subr.mxu1 %v2898_v0  ;;  %2540 = vmatmul.mubr.msk.f32.vlgmr.msra.gmra.mxu0 %vm51_vm1, %v35_v6  ;;  %v3011_v16 = vsel %vm214_vm4, 1.0, %v2900_v15  ;;  %v3034_v32 = vld [vmem:[%s3538_s5 + $0x18] sm:$0xff]  ;;  %v38_v35 = vld [vmem:[%s3535_s0 + $0x20] sm:$0xff]  ;;  %v3056_v36 = vld [vmem:[%s3538_s5 + $0x8] sm:$0xff] }
   0x7   :  { %2556 = vmatpush3.msra.mxu1 %v2985_v7  ;;  %2573 = vmatprep.subr.mxu0 %v2898_v0  ;;  %v39_v37 = vld [vmem:[%s3535_s0 + $0x28] sm:$0xff]  ;;  %v3068_v38 = vld [vmem:[%s3538_s5] sm:$0xff]  ;;  %v40_v40 = vld [vmem:[%s3535_s0 + $0x30] sm:$0xff] }
   0x8   :  { %2557 = vmatprep.subr.mxu1 %v2898_v0  ;;  %2542 = vmatprep.mubr.msk.f32.mxu0 %vm51_vm1, %v36_v29  ;;  %v3075_v39 = vld [vmem:[%s3537_s4 + $0x8] sm:$0xff]  ;;  %v41_v41 = vld [vmem:[%s3535_s0 + $0x38] sm:$0xff]  ;;  %v3096_v43 = vld [vmem:[%s3537_s4] sm:$0xff] }
   0x9   :  { %2558 = vmatpush3.msra.mxu1 %v2993_v8  ;;  %2574 = vmatpush3.msra.mxu0 %v3028_v31  ;;  %v3153_v56 = vld [vmem:[%s3539_s6] ss:$0 sm:$0xff] }
   0xa   :  { %2560 = vmatmul.mubr.f32.vlgmr.msra.gmra.mxu1 %v2898_v0  ;;  %2562 = vmatprep.subr.mxu1 %v2898_v0 }
   0xb   :  { %2570 = vmatprep.mubr.msk.f32.mxu1 %vm2899_vm0, %v2898_v0  ;;  %2563 = vmatpush3.msra.mxu1 %v3034_v32 }
   0xc   :  { %2543 = vmatmul.mubr.msk.f32.gmra.mxu0 %vm51_vm1, %v37_v30  ;;  %2564 = vmatprep.subr.mxu1 %v2898_v0 }
   0xd   :  { %2565 = vmatpush3.msra.mxu1 %v3039_v33  ;;  %2575 = vmatprep.subr.mxu0 %v2898_v0 }
   0xe   :  { %2566 = vmatprep.subr.mxu1 %v2898_v0  ;;  %2576 = vmatpush3.msra.mxu0 %v3046_v34 }
   0xf   :  { %2545 = vmatprep.mubr.msk.f32.mxu0 %vm51_vm1, %v38_v35  ;;  %2567 = vmatpush3.msra.mxu1 %v3056_v36 }
  0x10   :  { %2546 = vmatmul.mubr.msk.f32.gmra.mxu0 %vm51_vm1, %v39_v37  ;;  %2568 = vmatprep.subr.mxu1 %v2898_v0 }
  0x11   :  { %2569 = vmatpush3.msra.mxu1 %v3068_v38  ;;  %2577 = vmatprep.subr.mxu0 %v2898_v0 }
  0x12   :  { %2578 = vmatpush3.msra.mxu0 %v3075_v39  ;;  %2584 = vmatprep.subr.mxu1 %v2898_v0 }
  0x13   :  { %2548 = vmatprep.mubr.msk.f32.mxu0 %vm51_vm1, %v40_v40  ;;  %2571 = vmatmul.mubr.f32.vlgmr.msra.gmra.mxu1 %v2898_v0 }
  0x14   :  { %2585 = vmatpush3.msra.mxu1 %v2961_v2  ;;  %2549 = vmatmul.mubr.msk.f32.gmra.mxu0 %vm51_vm1, %v41_v41 }
  0x15   :  { %2586 = vmatprep.subr.mxu1 %v2898_v0  ;;  %2579 = vmatprep.subr.mxu0 %v2898_v0 }
  0x16   :  { %2587 = vmatpush3.msra.mxu1 %v2972_v4  ;;  %2580 = vmatpush3.msra.mxu0 %v3096_v43 }
  0x17   :  { %2588 = vmatprep.subr.mxu1 %v2898_v0  ;;  %2581 = vmatprep.mubr.msk.f32.mxu0 %vm2899_vm0, %v2898_v0 }
  0x18   :  { %2589 = vmatpush3.msra.mxu1 %v2985_v7  ;;  %2592 = vmatprep.mubr.msk.f32.mxu1 %vm2899_vm0, %v2898_v0 }
  0x19   :  { %2590 = vmatprep.subr.mxu1 %v2898_v0  ;;  %2595 = vmatprep.subr.mxu0 %v2898_v0 }
  0x1a   :  { %2591 = vmatpush3.msra.mxu1 %v2993_v8 }
  0x1b   :  { %2606 = vmatprep.subr.mxu1 %v2898_v0 }
  0xc6   :  { %v3003_v11 = vpop.f32.mrf.mxu0 }
  0xc7   :  { %v148_v55 = vadd.f32 %v3003_v11, %v3008_v12 }
  0xc8   :  { %v142_v13 = vpop.f32.mrf.mxu0 }
  0xc9   :  { %v143_v14 = vadd.f32 %v3008_v12, %v142_v13 }
  0xca   :  { %v286_v17 = vpop.f32.mrf.mxu1 }
  0xcb   :  { %v361_v18 = vadd.f32 %v286_v17, %v143_v14 }
  0xcc   :  { %v2561_v19 = vpop.f32.mrf.mxu1  ;;  %v3136_v49 = vpop.f32.mrf.mxu0 }
  0xcd   :  { %v362_v20 = vmul.f32 %v361_v18, %v3011_v16 }
  0xce   :  { %v3138_v50 = vpop.f32.mrf.mxu0 }
  0xcf   :  { %2821 = vtanh.f32 %v362_v20 }
  0xd0   :  { %v3140_v51 = vpop.f32.mrf.mxu0 }
  0xd2   :  { %v3142_v52 = vpop.f32.mrf.mxu0 }
  0xd3   :  { %v356_v46 = vpop.f32.mrf.mxu1 }
  0xd4   :  { %v3144_v53 = vpop.f32.mrf.mxu0 }
  0xd5   :  { %v2572_v47 = vpop.f32.mrf.mxu1 }
  0xd6   :  { %v3146_v54 = vpop.f32.mrf.mxu0 }
  0xdc   :  { %v2822_v21 = vpop.eup %2821 }
  0xdd   :  { %368 = vrot.lane.b32.xlu0 %v2822_v21, %s2901_s26  ;;  %v364_v22 = vmul.f32 0.5, %v2822_v21 }
  0xdf   :  { %v365_v23 = vadd.f32 0.5, %v364_v22 }
  0xe1   :  { %v366_v26 = vmul.f32 0.0, %v365_v23 }
 0x14f   :  { %v369_v24 = vpop.permute.xlu0 %368 }
 0x150   :  { %v371_v25 = vmul.f32 %v369_v24, %v365_v23 }
 0x152   :  { %373 = vrot.lane.b32.xlu0 %v371_v25, %s2902_s27 }
 0x1c4   :  { %v374_v27 = vpop.permute.xlu0 %373 }
 0x1c5   :  { %v3016_v28 = vadd.f32 %v374_v27, %v366_v26 }
 0x1c7   :  { %2823 = vtanh.f32 %v3016_v28 }
 0x1d4   :  { %v2824_v42 = vpop.eup %2823 }
 0x1d5   :  { %379 = vrot.lane.b32.xlu1 %v2824_v42, %s2901_s26 }
 0x247   :  { %v380_v44 = vpop.permute.xlu1 %379 }
 0x248   :  { %v382_v45 = vmul.f32 %v380_v44, %v365_v23 }
 0x24a   :  { %384 = vrot.lane.b32.xlu1 %v382_v45, %s2902_s27 }
 0x2bc   :  { %v385_v48 = vpop.permute.xlu1 %384 }
 0x2bd   :  { %2582 = vmatmul.mubr.msk.f32.vlgmr.msra.gmra.mxu0 %vm216_vm5, %v385_v48  ;;  %2593 = vmatmul.mubr.msk.f32.vlgmr.msra.gmra.mxu1 %vm216_vm5, %v385_v48  ;;  %v153_v48 = vadd.f32 %v3008_v12, %v3138_v50 }
 0x2be   :  { %2607 = vmatpush3.msra.mxu1 %v3028_v31  ;;  %2596 = vmatpush3.msra.mxu0 %v3034_v32 }
 0x2bf   :  { %2608 = vmatprep.subr.mxu1 %v2898_v0  ;;  %2597 = vmatprep.subr.mxu0 %v2898_v0 }
 0x2c0   :  { %2609 = vmatpush3.msra.mxu1 %v3046_v34  ;;  %2598 = vmatpush3.msra.mxu0 %v3039_v33 }
 0x2c1   :  { %2610 = vmatprep.subr.mxu1 %v2898_v0  ;;  %2599 = vmatprep.subr.mxu0 %v2898_v0 }
 0x2c2   :  { %2611 = vmatpush3.msra.mxu1 %v3075_v39  ;;  %2600 = vmatpush3.msra.mxu0 %v3056_v36 }
 0x2c3   :  { %2612 = vmatprep.subr.mxu1 %v2898_v0  ;;  %2614 = vmatprep.mubr.msk.f32.mxu1 %vm2899_vm0, %v2898_v0 }
 0x2c4   :  { %2613 = vmatpush3.msra.mxu1 %v3096_v43  ;;  %2601 = vmatprep.subr.mxu0 %v2898_v0 }
 0x2c5   :  { %2602 = vmatpush3.msra.mxu0 %v3068_v38  ;;  %2603 = vmatprep.mubr.msk.f32.mxu0 %vm2899_vm0, %v2898_v0 }
 0x2c6   :  { %2617 = vmatprep.subr.mxu0 %v2898_v0  ;;  %2628 = vmatprep.subr.mxu1 %v2898_v0 }
 0x37d   :  { %v454_v57 = vpop.f32.mrf.mxu0  ;;  %v546_v58 = vpop.f32.mrf.mxu1 }
 0x37e   :  { %v455_v59 = vadd.f32 %v454_v57, %v356_v46  ;;  %v627_v60 = vadd.f32 %v546_v58, %v148_v55 }
 0x37f   :  { %v2583_v61 = vpop.f32.mrf.mxu0  ;;  %v2594_v62 = vpop.f32.mrf.mxu1 }
 0x380   :  { %v458_v63 = vadd.f32 %v3153_v56, %v455_v59  ;;  %v628_v1 = vmul.f32 %v627_v60, %v3011_v16 }
 0x382   :  { %v459_v3 = vmul.f32 %v458_v63, %v3011_v16  ;;  %2825 = vtanh.f32 %v628_v1 }
 0x384   :  { %2827 = vtanh.f32 %v459_v3 }
 0x38f   :  { %v2826_v5 = vpop.eup %2825 }
 0x390   :  { %634 = vrot.lane.b32.xlu1 %v2826_v5, %s2901_s26  ;;  %v630_v9 = vmul.f32 0.5, %v2826_v5 }
 0x391   :  { %v2828_v6 = vpop.eup %2827 }
 0x392   :  { %465 = vrot.lane.b32.xlu0 %v2828_v6, %s2901_s26  ;;  %v461_v10 = vmul.f32 0.5, %v2828_v6  ;;  %v631_v11 = vadd.f32 0.5, %v630_v9 }
 0x394   :  { %v462_v15 = vadd.f32 0.5, %v461_v10  ;;  %v632_v19 = vmul.f32 %v631_v11, %v3016_v28 }
 0x396   :  { %v463_v22 = vmul.f32 0.0, %v462_v15 }
 0x402   :  { %v635_v13 = vpop.permute.xlu1 %634 }
 0x403   :  { %v637_v14 = vmul.f32 %v635_v13, %v631_v11 }
 0x404   :  { %v466_v17 = vpop.permute.xlu0 %465 }
 0x405   :  { %v468_v18 = vmul.f32 %v466_v17, %v462_v15  ;;  %639 = vrot.lane.b32.xlu1 %v637_v14, %s2902_s27 }
 0x407   :  { %470 = vrot.lane.b32.xlu0 %v468_v18, %s2902_s27 }
 0x477   :  { %v640_v20 = vpop.permute.xlu1 %639 }
 0x478   :  { %v3163_v21 = vadd.f32 %v640_v20, %v632_v19 }
 0x479   :  { %v471_v23 = vpop.permute.xlu0 %470 }
 0x47a   :  { %2829 = vtanh.f32 %v3163_v21  ;;  %v3166_v24 = vadd.f32 %v471_v23, %v463_v22 }
 0x47c   :  { %2831 = vtanh.f32 %v3166_v24 }
 0x487   :  { %v2830_v25 = vpop.eup %2829 }
 0x488   :  { %645 = vrot.lane.b32.xlu1 %v2830_v25, %s2901_s26 }
 0x489   :  { %v2832_v26 = vpop.eup %2831 }
 0x48a   :  { %476 = vrot.lane.b32.xlu0 %v2832_v26, %s2901_s26 }
 0x4fa   :  { %v646_v27 = vpop.permute.xlu1 %645 }
 0x4fb   :  { %v648_v29 = vmul.f32 %v646_v27, %v631_v11 }
 0x4fc   :  { %v477_v28 = vpop.permute.xlu0 %476 }
 0x4fd   :  { %v479_v30 = vmul.f32 %v477_v28, %v462_v15  ;;  %650 = vrot.lane.b32.xlu1 %v648_v29, %s2902_s27  ;;  %v158_v28 = vadd.f32 %v3136_v49, %v3008_v12 }
 0x4ff   :  { %551 = vrot.lane.b32.xlu0 %v479_v30, %s2902_s27 }
 0x56f   :  { %v651_v35 = vpop.permute.xlu1 %650 }
 0x570   :  { %2615 = vmatmul.mubr.msk.f32.vlgmr.msra.gmra.mxu1 %vm216_vm5, %v651_v35 }
 0x571   :  { %v552_v37 = vpop.permute.xlu0 %551  ;;  %2629 = vmatpush3.msra.mxu1 %v3034_v32  ;;  %2636 = vmatprep.mubr.msk.f32.mxu1 %vm2899_vm0, %v2898_v0 }
 0x572   :  { %2604 = vmatmul.mubr.msk.f32.vlgmr.msra.gmra.mxu0 %vm216_vm5, %v552_v37  ;;  %2630 = vmatprep.subr.mxu1 %v2898_v0 }
 0x573   :  { %2618 = vmatpush3.msra.mxu0 %v2961_v2  ;;  %2625 = vmatprep.mubr.msk.f32.mxu0 %vm2899_vm0, %v2898_v0 }
 0x574   :  { %2619 = vmatprep.subr.mxu0 %v2898_v0  ;;  %2631 = vmatpush3.msra.mxu1 %v3039_v33 }
 0x575   :  { %2620 = vmatpush3.msra.mxu0 %v2972_v4  ;;  %2632 = vmatprep.subr.mxu1 %v2898_v0 }
 0x576   :  { %2621 = vmatprep.subr.mxu0 %v2898_v0  ;;  %2633 = vmatpush3.msra.mxu1 %v3056_v36 }
 0x577   :  { %2622 = vmatpush3.msra.mxu0 %v2985_v7  ;;  %2634 = vmatprep.subr.mxu1 %v2898_v0 }
 0x578   :  { %2623 = vmatprep.subr.mxu0 %v2898_v0  ;;  %2635 = vmatpush3.msra.mxu1 %v3068_v38 }
 0x579   :  { %2624 = vmatpush3.msra.mxu0 %v2993_v8  ;;  %2650 = vmatprep.subr.mxu1 %v2898_v0 }
 0x57a   :  { %2626 = vmatmul.mubr.msk.f32.vlgmr.msra.gmra.mxu0 %vm216_vm5, %v651_v35  ;;  %2639 = vmatprep.subr.mxu0 %v2898_v0 }
 0x57b   :  { %2640 = vmatpush3.msra.mxu0 %v3028_v31  ;;  %2647 = vmatprep.mubr.msk.f32.mxu0 %vm2899_vm0, %v2898_v0 }
 0x57c   :  { %2641 = vmatprep.subr.mxu0 %v2898_v0 }
 0x57d   :  { %2642 = vmatpush3.msra.mxu0 %v3046_v34 }
 0x57e   :  { %2643 = vmatprep.subr.mxu0 %v2898_v0 }
 0x57f   :  { %2644 = vmatpush3.msra.mxu0 %v3075_v39 }
 0x580   :  { %2645 = vmatprep.subr.mxu0 %v2898_v0 }
 0x581   :  { %2646 = vmatpush3.msra.mxu0 %v3096_v43 }
 0x582   :  { %2661 = vmatprep.subr.mxu0 %v2898_v0 }
 0x630   :  { %v720_v40 = vpop.f32.mrf.mxu1 }
 0x632   :  { %v621_v41 = vpop.f32.mrf.mxu0  ;;  %v2616_v42 = vpop.f32.mrf.mxu1 }
 0x633   :  { %v721_v44 = vadd.f32 %v720_v40, %v621_v41 }
 0x634   :  { %v2605_v45 = vpop.f32.mrf.mxu0 }
 0x635   :  { %v724_v46 = vadd.f32 %v3153_v56, %v721_v44 }
 0x637   :  { %v725_v47 = vmul.f32 %v724_v46, %v3011_v16 }
 0x639   :  { %2833 = vtanh.f32 %v725_v47 }
 0x63a   :  { %v812_v55 = vpop.f32.mrf.mxu0 }
 0x63b   :  { %v893_v57 = vadd.f32 %v812_v55, %v153_v48 }
 0x63c   :  { %v2627_v58 = vpop.f32.mrf.mxu0 }
 0x63d   :  { %v894_v59 = vmul.f32 %v893_v57, %v3011_v16 }
 0x63f   :  { %2835 = vtanh.f32 %v894_v59 }
 0x646   :  { %v2834_v60 = vpop.eup %2833 }
 0x647   :  { %731 = vrot.lane.b32.xlu0 %v2834_v60, %s2901_s26  ;;  %v727_v62 = vmul.f32 0.5, %v2834_v60 }
 0x649   :  { %v728_v63 = vadd.f32 0.5, %v727_v62 }
 0x64b   :  { %v729_v10 = vmul.f32 %v728_v63, %v3166_v24 }
 0x64c   :  { %v2836_v61 = vpop.eup %2835 }
 0x64d   :  { %900 = vrot.lane.b32.xlu1 %v2836_v61, %s2901_s26  ;;  %v896_v5 = vmul.f32 0.5, %v2836_v61 }
 0x64f   :  { %v897_v50 = vadd.f32 0.5, %v896_v5 }
 0x651   :  { %v898_v14 = vmul.f32 %v897_v50, %v3163_v21 }
 0x6b9   :  { %v732_v1 = vpop.permute.xlu0 %731 }
 0x6ba   :  { %v734_v3 = vmul.f32 %v732_v1, %v728_v63 }
 0x6bc   :  { %736 = vrot.lane.b32.xlu0 %v734_v3, %s2902_s27 }
 0x6bf   :  { %v901_v6 = vpop.permute.xlu1 %900 }
 0x6c0   :  { %v903_v9 = vmul.f32 %v901_v6, %v897_v50 }
 0x6c2   :  { %905 = vrot.lane.b32.xlu1 %v903_v9, %s2902_s27 }
 0x72e   :  { %v737_v11 = vpop.permute.xlu0 %736 }
 0x72f   :  { %v3216_v13 = vadd.f32 %v737_v11, %v729_v10 }
 0x731   :  { %2837 = vtanh.f32 %v3216_v13 }
 0x734   :  { %v906_v15 = vpop.permute.xlu1 %905 }
 0x735   :  { %v3220_v17 = vadd.f32 %v906_v15, %v898_v14 }
 0x737   :  { %2839 = vtanh.f32 %v3220_v17 }
 0x73e   :  { %v2838_v18 = vpop.eup %2837 }
 0x73f   :  { %742 = vrot.lane.b32.xlu0 %v2838_v18, %s2901_s26 }
 0x744   :  { %v2840_v19 = vpop.eup %2839 }
 0x745   :  { %911 = vrot.lane.b32.xlu1 %v2840_v19, %s2901_s26 }
 0x7b1   :  { %v743_v20 = vpop.permute.xlu0 %742 }
 0x7b2   :  { %v745_v22 = vmul.f32 %v743_v20, %v728_v63 }
 0x7b4   :  { %817 = vrot.lane.b32.xlu0 %v745_v22, %s2902_s27 }
 0x7b7   :  { %v912_v23 = vpop.permute.xlu1 %911 }
 0x7b8   :  { %v914_v24 = vmul.f32 %v912_v23, %v897_v50 }
 0x7ba   :  { %916 = vrot.lane.b32.xlu1 %v914_v24, %s2902_s27 }
 0x826   :  { %v818_v21 = vpop.permute.xlu0 %817 }
 0x827   :  { %2637 = vmatmul.mubr.msk.f32.vlgmr.msra.gmra.mxu1 %vm216_vm5, %v818_v21 }
 0x828   :  { %2651 = vmatpush3.msra.mxu1 %v2961_v2  ;;  %2658 = vmatprep.mubr.msk.f32.mxu1 %vm2899_vm0, %v2898_v0 }
 0x829   :  { %2652 = vmatprep.subr.mxu1 %v2898_v0 }
 0x82a   :  { %2653 = vmatpush3.msra.mxu1 %v2972_v4 }
 0x82b   :  { %2654 = vmatprep.subr.mxu1 %v2898_v0 }
 0x82c   :  { %2655 = vmatpush3.msra.mxu1 %v2985_v7  ;;  %v917_v25 = vpop.permute.xlu1 %916 }
 0x82d   :  { %2648 = vmatmul.mubr.msk.f32.vlgmr.msra.gmra.mxu0 %vm216_vm5, %v917_v25  ;;  %2656 = vmatprep.subr.mxu1 %v2898_v0 }
 0x82e   :  { %2657 = vmatpush3.msra.mxu1 %v2993_v8  ;;  %2662 = vmatpush3.msra.mxu0 %v3034_v32 }
 0x82f   :  { %2659 = vmatmul.mubr.msk.f32.vlgmr.msra.gmra.mxu1 %vm216_vm5, %v917_v25  ;;  %2672 = vmatprep.subr.mxu1 %v2898_v0  ;;  %v163_v25 = vadd.f32 %v3008_v12, %v3142_v52 }
 0x830   :  { %2663 = vmatprep.subr.mxu0 %v2898_v0  ;;  %2673 = vmatpush3.msra.mxu1 %v3028_v31 }
 0x831   :  { %2664 = vmatpush3.msra.mxu0 %v3039_v33  ;;  %2674 = vmatprep.subr.mxu1 %v2898_v0 }
 0x832   :  { %2665 = vmatprep.subr.mxu0 %v2898_v0  ;;  %2675 = vmatpush3.msra.mxu1 %v3046_v34 }
 0x833   :  { %2666 = vmatpush3.msra.mxu0 %v3056_v36  ;;  %2676 = vmatprep.subr.mxu1 %v2898_v0 }
 0x834   :  { %2667 = vmatprep.subr.mxu0 %v2898_v0  ;;  %2677 = vmatpush3.msra.mxu1 %v3075_v39 }
 0x835   :  { %2668 = vmatpush3.msra.mxu0 %v3068_v38  ;;  %2678 = vmatprep.subr.mxu1 %v2898_v0 }
 0x836   :  { %2679 = vmatpush3.msra.mxu1 %v3096_v43  ;;  %2680 = vmatprep.mubr.msk.f32.mxu1 %vm2899_vm0, %v2898_v0 }
 0x837   :  { %2669 = vmatprep.mubr.msk.f32.mxu0 %vm2899_vm0, %v2898_v0  ;;  %2683 = vmatprep.subr.mxu0 %v2898_v0 }
 0x838   :  { %2694 = vmatprep.subr.mxu1 %v2898_v0 }
 0x8e7   :  { %v887_v26 = vpop.f32.mrf.mxu1 }
 0x8e9   :  { %v2638_v27 = vpop.f32.mrf.mxu1 }
 0x8ed   :  { %v986_v29 = vpop.f32.mrf.mxu0 }
 0x8ee   :  { %v987_v30 = vadd.f32 %v986_v29, %v887_v26 }
 0x8ef   :  { %v2649_v35 = vpop.f32.mrf.mxu0  ;;  %v1078_v37 = vpop.f32.mrf.mxu1 }
 0x8f0   :  { %v990_v40 = vadd.f32 %v3153_v56, %v987_v30  ;;  %v1159_v41 = vadd.f32 %v1078_v37, %v158_v28 }
 0x8f1   :  { %v2660_v42 = vpop.f32.mrf.mxu1 }
 0x8f2   :  { %v991_v44 = vmul.f32 %v990_v40, %v3011_v16  ;;  %v1160_v45 = vmul.f32 %v1159_v41, %v3011_v16 }
 0x8f4   :  { %2841 = vtanh.f32 %v991_v44 }
 0x8f5   :  { %2843 = vtanh.f32 %v1160_v45 }
 0x901   :  { %v2842_v46 = vpop.eup %2841 }
 0x902   :  { %v2844_v47 = vpop.eup %2843  ;;  %997 = vrot.lane.b32.xlu0 %v2842_v46, %s2901_s26  ;;  %v993_v49 = vmul.f32 0.5, %v2842_v46 }
 0x903   :  { %1166 = vrot.lane.b32.xlu1 %v2844_v47, %s2901_s26  ;;  %v1162_v48 = vmul.f32 0.5, %v2844_v47 }
 0x904   :  { %v994_v55 = vadd.f32 0.5, %v993_v49 }
 0x905   :  { %v1163_v57 = vadd.f32 0.5, %v1162_v48 }
 0x906   :  { %v995_v62 = vmul.f32 %v994_v55, %v3216_v13 }
 0x907   :  { %v1164_v63 = vmul.f32 %v1163_v57, %v3220_v17 }
 0x974   :  { %v998_v58 = vpop.permute.xlu0 %997 }
 0x975   :  { %v1167_v59 = vpop.permute.xlu1 %1166  ;;  %v1000_v60 = vmul.f32 %v998_v58, %v994_v55 }
 0x976   :  { %v1169_v61 = vmul.f32 %v1167_v59, %v1163_v57 }
 0x977   :  { %1002 = vrot.lane.b32.xlu0 %v1000_v60, %s2902_s27 }
 0x978   :  { %1171 = vrot.lane.b32.xlu1 %v1169_v61, %s2902_s27 }
 0x9e9   :  { %v1003_v1 = vpop.permute.xlu0 %1002 }
 0x9ea   :  { %v1172_v3 = vpop.permute.xlu1 %1171  ;;  %v3271_v5 = vadd.f32 %v1003_v1, %v995_v62 }
 0x9eb   :  { %v3273_v50 = vadd.f32 %v1172_v3, %v1164_v63 }
 0x9ec   :  { %2845 = vtanh.f32 %v3271_v5 }
 0x9ed   :  { %2847 = vtanh.f32 %v3273_v50 }
 0x9f9   :  { %v2846_v6 = vpop.eup %2845 }
 0x9fa   :  { %v2848_v9 = vpop.eup %2847  ;;  %1008 = vrot.lane.b32.xlu0 %v2846_v6, %s2901_s26 }
 0x9fb   :  { %1177 = vrot.lane.b32.xlu1 %v2848_v9, %s2901_s26 }
 0xa6c   :  { %v1009_v10 = vpop.permute.xlu0 %1008 }
 0xa6d   :  { %v1178_v11 = vpop.permute.xlu1 %1177  ;;  %v1011_v13 = vmul.f32 %v1009_v10, %v994_v55 }
 0xa6e   :  { %v1180_v14 = vmul.f32 %v1178_v11, %v1163_v57  ;;  %v168_v11 = vadd.f32 %v3140_v51, %v3008_v12 }
 0xa6f   :  { %1083 = vrot.lane.b32.xlu0 %v1011_v13, %s2902_s27 }
 0xa70   :  { %1182 = vrot.lane.b32.xlu1 %v1180_v14, %s2902_s27 }
 0xae1   :  { %v1084_v15 = vpop.permute.xlu0 %1083 }
 0xae2   :  { %v1183_v17 = vpop.permute.xlu1 %1182  ;;  %2670 = vmatmul.mubr.msk.f32.vlgmr.msra.gmra.mxu0 %vm216_vm5, %v1084_v15 }
 0xae3   :  { %2681 = vmatmul.mubr.msk.f32.vlgmr.msra.gmra.mxu1 %vm216_vm5, %v1183_v17  ;;  %2684 = vmatpush3.msra.mxu0 %v2961_v2 }
 0xae4   :  { %2685 = vmatprep.subr.mxu0 %v2898_v0  ;;  %2691 = vmatprep.mubr.msk.f32.mxu0 %vm2899_vm0, %v2898_v0 }
 0xae5   :  { %2686 = vmatpush3.msra.mxu0 %v2972_v4  ;;  %2695 = vmatpush3.msra.mxu1 %v3034_v32 }
 0xae6   :  { %2687 = vmatprep.subr.mxu0 %v2898_v0  ;;  %2696 = vmatprep.subr.mxu1 %v2898_v0 }
 0xae7   :  { %2688 = vmatpush3.msra.mxu0 %v2985_v7  ;;  %2697 = vmatpush3.msra.mxu1 %v3039_v33 }
 0xae8   :  { %2689 = vmatprep.subr.mxu0 %v2898_v0  ;;  %2698 = vmatprep.subr.mxu1 %v2898_v0 }
 0xae9   :  { %2690 = vmatpush3.msra.mxu0 %v2993_v8  ;;  %2699 = vmatpush3.msra.mxu1 %v3056_v36 }
 0xaea   :  { %2692 = vmatmul.mubr.msk.f32.vlgmr.msra.gmra.mxu0 %vm216_vm5, %v1183_v17  ;;  %2700 = vmatprep.subr.mxu1 %v2898_v0 }
 0xaeb   :  { %2705 = vmatprep.subr.mxu0 %v2898_v0  ;;  %2701 = vmatpush3.msra.mxu1 %v3068_v38 }
 0xaec   :  { %2706 = vmatpush3.msra.mxu0 %v3028_v31  ;;  %2702 = vmatprep.mubr.msk.f32.mxu1 %vm2899_vm0, %v2898_v0 }
 0xaed   :  { %2707 = vmatprep.subr.mxu0 %v2898_v0  ;;  %2716 = vmatprep.subr.mxu1 %v2898_v0 }
 0xaee   :  { %2708 = vmatpush3.msra.mxu0 %v3046_v34  ;;  %2713 = vmatprep.mubr.msk.f32.mxu0 %vm2899_vm0, %v2898_v0 }
 0xaef   :  { %2709 = vmatprep.subr.mxu0 %v2898_v0 }
 0xaf0   :  { %2710 = vmatpush3.msra.mxu0 %v3075_v39 }
 0xaf1   :  { %2711 = vmatprep.subr.mxu0 %v2898_v0 }
 0xaf2   :  { %2712 = vmatpush3.msra.mxu0 %v3096_v43 }
 0xaf3   :  { %2727 = vmatprep.subr.mxu0 %v2898_v0 }
 0xba2   :  { %v1153_v18 = vpop.f32.mrf.mxu0 }
 0xba3   :  { %v1252_v19 = vpop.f32.mrf.mxu1 }
 0xba4   :  { %v1253_v20 = vadd.f32 %v1252_v19, %v1153_v18  ;;  %v2671_v22 = vpop.f32.mrf.mxu0 }
 0xba5   :  { %v2682_v23 = vpop.f32.mrf.mxu1 }
 0xba6   :  { %v1256_v24 = vadd.f32 %v3153_v56, %v1253_v20 }
 0xba8   :  { %v1257_v21 = vmul.f32 %v1256_v24, %v3011_v16 }
 0xbaa   :  { %2849 = vtanh.f32 %v1257_v21  ;;  %v1344_v26 = vpop.f32.mrf.mxu0 }
 0xbab   :  { %v1425_v27 = vadd.f32 %v1344_v26, %v163_v25 }
 0xbac   :  { %v2693_v29 = vpop.f32.mrf.mxu0 }
 0xbad   :  { %v1426_v28 = vmul.f32 %v1425_v27, %v3011_v16 }
 0xbaf   :  { %2851 = vtanh.f32 %v1426_v28 }
 0xbb7   :  { %v2850_v30 = vpop.eup %2849 }
 0xbb8   :  { %1263 = vrot.lane.b32.xlu0 %v2850_v30, %s2901_s26  ;;  %v1259_v37 = vmul.f32 0.5, %v2850_v30 }
 0xbba   :  { %v1260_v40 = vadd.f32 0.5, %v1259_v37 }
 0xbbc   :  { %v2852_v35 = vpop.eup %2851  ;;  %v1261_v47 = vmul.f32 %v1260_v40, %v3271_v5 }
 0xbbd   :  { %1432 = vrot.lane.b32.xlu1 %v2852_v35, %s2901_s26  ;;  %v1428_v42 = vmul.f32 0.5, %v2852_v35 }
 0xbbf   :  { %v1429_v52 = vadd.f32 0.5, %v1428_v42 }
 0xbc1   :  { %v1430_v55 = vmul.f32 %v1429_v52, %v3273_v50 }
 0xc2a   :  { %v1264_v41 = vpop.permute.xlu0 %1263 }
 0xc2b   :  { %v1266_v44 = vmul.f32 %v1264_v41, %v1260_v40 }
 0xc2d   :  { %1268 = vrot.lane.b32.xlu0 %v1266_v44, %s2902_s27 }
 0xc2f   :  { %v1433_v45 = vpop.permute.xlu1 %1432 }
 0xc30   :  { %v1435_v46 = vmul.f32 %v1433_v45, %v1429_v52 }
 0xc32   :  { %1437 = vrot.lane.b32.xlu1 %v1435_v46, %s2902_s27 }
 0xc9f   :  { %v1269_v49 = vpop.permute.xlu0 %1268 }
 0xca0   :  { %v3324_v48 = vadd.f32 %v1269_v49, %v1261_v47 }
 0xca2   :  { %2853 = vtanh.f32 %v3324_v48 }
 0xca4   :  { %v1438_v57 = vpop.permute.xlu1 %1437 }
 0xca5   :  { %v3328_v58 = vadd.f32 %v1438_v57, %v1430_v55 }
 0xca7   :  { %2855 = vtanh.f32 %v3328_v58 }
 0xcaf   :  { %v2854_v59 = vpop.eup %2853 }
 0xcb0   :  { %1274 = vrot.lane.b32.xlu0 %v2854_v59, %s2901_s26 }
 0xcb4   :  { %v2856_v60 = vpop.eup %2855 }
 0xcb5   :  { %1443 = vrot.lane.b32.xlu1 %v2856_v60, %s2901_s26 }
 0xd22   :  { %v1275_v61 = vpop.permute.xlu0 %1274 }
 0xd23   :  { %v1277_v62 = vmul.f32 %v1275_v61, %v1260_v40 }
 0xd25   :  { %1349 = vrot.lane.b32.xlu0 %v1277_v62, %s2902_s27 }
 0xd27   :  { %v1444_v63 = vpop.permute.xlu1 %1443 }
 0xd28   :  { %v1446_v1 = vmul.f32 %v1444_v63, %v1429_v52 }
 0xd2a   :  { %1448 = vrot.lane.b32.xlu1 %v1446_v1, %s2902_s27 }
 0xd97   :  { %v1350_v3 = vpop.permute.xlu0 %1349 }
 0xd98   :  { %2703 = vmatmul.mubr.msk.f32.vlgmr.msra.gmra.mxu1 %vm216_vm5, %v1350_v3 }
 0xd99   :  { %2717 = vmatpush3.msra.mxu1 %v2961_v2  ;;  %2724 = vmatprep.mubr.msk.f32.mxu1 %vm2899_vm0, %v2898_v0 }
 0xd9a   :  { %2718 = vmatprep.subr.mxu1 %v2898_v0 }
 0xd9b   :  { %2719 = vmatpush3.msra.mxu1 %v2972_v4 }
 0xd9c   :  { %2720 = vmatprep.subr.mxu1 %v2898_v0  ;;  %v1449_v5 = vpop.permute.xlu1 %1448 }
 0xd9d   :  { %2721 = vmatpush3.msra.mxu1 %v2985_v7  ;;  %2714 = vmatmul.mubr.msk.f32.vlgmr.msra.gmra.mxu0 %vm216_vm5, %v1449_v5 }
 0xd9e   :  { %2722 = vmatprep.subr.mxu1 %v2898_v0  ;;  %2728 = vmatpush3.msra.mxu0 %v3034_v32 }
 0xd9f   :  { %2723 = vmatpush3.msra.mxu1 %v2993_v8  ;;  %2729 = vmatprep.subr.mxu0 %v2898_v0 }
 0xda0   :  { %2725 = vmatmul.mubr.msk.f32.vlgmr.msra.gmra.mxu1 %vm216_vm5, %v1449_v5  ;;  %2738 = vmatprep.subr.mxu1 %v2898_v0 }
 0xda1   :  { %2739 = vmatpush3.msra.mxu1 %v3028_v31  ;;  %2730 = vmatpush3.msra.mxu0 %v3039_v33 }
 0xda2   :  { %2740 = vmatprep.subr.mxu1 %v2898_v0  ;;  %2731 = vmatprep.subr.mxu0 %v2898_v0 }
 0xda3   :  { %2741 = vmatpush3.msra.mxu1 %v3046_v34  ;;  %2732 = vmatpush3.msra.mxu0 %v3056_v36 }
 0xda4   :  { %2742 = vmatprep.subr.mxu1 %v2898_v0  ;;  %2733 = vmatprep.subr.mxu0 %v2898_v0 }
 0xda5   :  { %2743 = vmatpush3.msra.mxu1 %v3075_v39  ;;  %2734 = vmatpush3.msra.mxu0 %v3068_v38 }
 0xda6   :  { %2744 = vmatprep.subr.mxu1 %v2898_v0  ;;  %2746 = vmatprep.mubr.msk.f32.mxu1 %vm2899_vm0, %v2898_v0 }
 0xda7   :  { %2745 = vmatpush3.msra.mxu1 %v3096_v43  ;;  %2735 = vmatprep.mubr.msk.f32.mxu0 %vm2899_vm0, %v2898_v0 }
 0xda8   :  { %2749 = vmatprep.subr.mxu0 %v2898_v0  ;;  %2760 = vmatprep.subr.mxu1 %v2898_v0 }
 0xe58   :  { %v1419_v50 = vpop.f32.mrf.mxu1 }
 0xe5a   :  { %v2704_v6 = vpop.f32.mrf.mxu1 }
 0xe5d   :  { %v1518_v9 = vpop.f32.mrf.mxu0 }
 0xe5e   :  { %v1519_v10 = vadd.f32 %v1518_v9, %v1419_v50 }
 0xe5f   :  { %v2715_v13 = vpop.f32.mrf.mxu0 }
 0xe60   :  { %v1522_v14 = vadd.f32 %v3153_v56, %v1519_v10  ;;  %v1610_v15 = vpop.f32.mrf.mxu1 }
 0xe61   :  { %v1691_v17 = vadd.f32 %v1610_v15, %v168_v11 }
 0xe62   :  { %v1523_v18 = vmul.f32 %v1522_v14, %v3011_v16  ;;  %v2726_v19 = vpop.f32.mrf.mxu1 }
 0xe63   :  { %v1692_v20 = vmul.f32 %v1691_v17, %v3011_v16 }
 0xe64   :  { %2857 = vtanh.f32 %v1523_v18 }
 0xe65   :  { %2859 = vtanh.f32 %v1692_v20 }
 0xe71   :  { %v2858_v22 = vpop.eup %2857 }
 0xe72   :  { %v2860_v23 = vpop.eup %2859  ;;  %1529 = vrot.lane.b32.xlu0 %v2858_v22, %s2901_s26  ;;  %v1525_v24 = vmul.f32 0.5, %v2858_v22  ;;  %v2885_v22 = vld [vmem:[%s3534_s3 + $0x18] sm:$0xff] }
 0xe73   :  { %1698 = vrot.lane.b32.xlu1 %v2860_v23, %s2901_s26  ;;  %v1694_v51 = vmul.f32 0.5, %v2860_v23  ;;  %v2886_v23 = vld [vmem:[%s3534_s3 + $0x10] sm:$0xff] }
 0xe74   :  { %v1526_v21 = vadd.f32 0.5, %v1525_v24 }
 0xe75   :  { %v1695_v25 = vadd.f32 0.5, %v1694_v51  ;;  %v2887_v51 = vld [vmem:[%s3534_s3 + $0x8] sm:$0xff] }
 0xe76   :  { %v1527_v30 = vmul.f32 %v1526_v21, %v3324_v48 }
 0xe77   :  { %v1696_v35 = vmul.f32 %v1695_v25, %v3328_v58 }
 0xee4   :  { %v1530_v26 = vpop.permute.xlu0 %1529 }
 0xee5   :  { %v1699_v27 = vpop.permute.xlu1 %1698  ;;  %v1532_v29 = vmul.f32 %v1530_v26, %v1526_v21  ;;  %v2890_v26 = vld [vmem:[%s3537_s4 + $0x18] sm:$0xff] }
 0xee6   :  { %v1701_v28 = vmul.f32 %v1699_v27, %v1695_v25  ;;  %v2891_v27 = vld [vmem:[%s3538_s5 + $0x10] sm:$0xff] }
 0xee7   :  { %1534 = vrot.lane.b32.xlu0 %v1532_v29, %s2902_s27  ;;  %v2892_v29 = vld [vmem:[%s3537_s4 + $0x10] sm:$0xff] }
 0xee8   :  { %1703 = vrot.lane.b32.xlu1 %v1701_v28, %s2902_s27  ;;  %v2893_v28 = vld [vmem:[%s3538_s5 + $0x8] sm:$0xff] }
 0xf59   :  { %v1535_v37 = vpop.permute.xlu0 %1534 }
 0xf5a   :  { %v1704_v40 = vpop.permute.xlu1 %1703  ;;  %v3379_v41 = vadd.f32 %v1535_v37, %v1527_v30  ;;  %v2894_v30 = vld [vmem:[%s3537_s4 + $0x8] sm:$0xff] }
 0xf5b   :  { %v3381_v42 = vadd.f32 %v1704_v40, %v1696_v35  ;;  %v2895_v35 = vld [vmem:[%s3538_s5] sm:$0xff] }
 0xf5c   :  { %2861 = vtanh.f32 %v3379_v41 }
 0xf5d   :  { %2863 = vtanh.f32 %v3381_v42 }
 0xf69   :  { %v2862_v44 = vpop.eup %2861 }
 0xf6a   :  { %v2864_v52 = vpop.eup %2863  ;;  %1540 = vrot.lane.b32.xlu0 %v2862_v44, %s2901_s26  ;;  %v2896_v44 = vld [vmem:[%s3536_s2] ss:$0 sm:$0xff] }
 0xf6b   :  { %1709 = vrot.lane.b32.xlu1 %v2864_v52, %s2901_s26  ;;  %v178_v52 = vadd.f32 %v2896_v44, %v3144_v53 }
 0xfdc   :  { %v1541_v45 = vpop.permute.xlu0 %1540 }
 0xfdd   :  { %v1710_v46 = vpop.permute.xlu1 %1709  ;;  %v1543_v47 = vmul.f32 %v1541_v45, %v1526_v21  ;;  %v2888_v21 = vld [vmem:[%s3538_s5 + $0x18] sm:$0xff] }
 0xfde   :  { %v1712_v49 = vmul.f32 %v1710_v46, %v1695_v25  ;;  %v2889_v25 = vld [vmem:[%s3534_s3] sm:$0xff] }
 0xfdf   :  { %1615 = vrot.lane.b32.xlu0 %v1543_v47, %s2902_s27 }
 0xfe0   :  { %1714 = vrot.lane.b32.xlu1 %v1712_v49, %s2902_s27 }
0x1051   :  { %v1616_v48 = vpop.permute.xlu0 %1615 }
0x1052   :  { %v1715_v55 = vpop.permute.xlu1 %1714  ;;  %2736 = vmatmul.mubr.msk.f32.vlgmr.msra.gmra.mxu0 %vm216_vm5, %v1616_v48 }
0x1053   :  { %2747 = vmatmul.mubr.msk.f32.vlgmr.msra.gmra.mxu1 %vm216_vm5, %v1715_v55  ;;  %2750 = vmatpush3.msra.mxu0 %v2961_v2 }
0x1054   :  { %2751 = vmatprep.subr.mxu0 %v2898_v0  ;;  %2757 = vmatprep.mubr.msk.f32.mxu0 %vm2899_vm0, %v2898_v0 }
0x1055   :  { %2752 = vmatpush3.msra.mxu0 %v2972_v4  ;;  %2761 = vmatpush3.msra.mxu1 %v3034_v32 }
0x1056   :  { %2753 = vmatprep.subr.mxu0 %v2898_v0  ;;  %2762 = vmatprep.subr.mxu1 %v2898_v0 }
0x1057   :  { %2754 = vmatpush3.msra.mxu0 %v2985_v7  ;;  %2763 = vmatpush3.msra.mxu1 %v3039_v33 }
0x1058   :  { %2755 = vmatprep.subr.mxu0 %v2898_v0  ;;  %2764 = vmatprep.subr.mxu1 %v2898_v0 }
0x1059   :  { %2756 = vmatpush3.msra.mxu0 %v2993_v8  ;;  %2765 = vmatpush3.msra.mxu1 %v3056_v36 }
0x105a   :  { %2758 = vmatmul.mubr.msk.f32.vlgmr.msra.gmra.mxu0 %vm216_vm5, %v1715_v55  ;;  %2766 = vmatprep.subr.mxu1 %v2898_v0 }
0x105b   :  { %2771 = vmatprep.subr.mxu0 %v2898_v0  ;;  %2767 = vmatpush3.msra.mxu1 %v3068_v38 }
0x105c   :  { %2772 = vmatpush3.msra.mxu0 %v3028_v31  ;;  %2768 = vmatprep.mubr.msk.f32.mxu1 %vm2899_vm0, %v2898_v0 }
0x105d   :  { %2773 = vmatprep.subr.mxu0 %v2898_v0  ;;  %2782 = vmatprep.subr.mxu1 %v2898_v0 }
0x105e   :  { %2774 = vmatpush3.msra.mxu0 %v3046_v34  ;;  %2779 = vmatprep.mubr.msk.f32.mxu0 %vm2899_vm0, %v2898_v0  ;;  %v173_v34 = vadd.f32 %v3008_v12, %v3146_v54 }
0x105f   :  { %2775 = vmatprep.subr.mxu0 %v2898_v0 }
0x1060   :  { %2776 = vmatpush3.msra.mxu0 %v3075_v39 }
0x1061   :  { %2777 = vmatprep.subr.mxu0 %v2898_v0 }
0x1062   :  { %2778 = vmatpush3.msra.mxu0 %v3096_v43 }
0x1063   :  { %2793 = vmatprep.subr.mxu0 %v2898_v0 }
0x1112   :  { %v1685_v2 = vpop.f32.mrf.mxu0 }
0x1113   :  { %v1784_v4 = vpop.f32.mrf.mxu1 }
0x1114   :  { %v1785_v7 = vadd.f32 %v1784_v4, %v1685_v2  ;;  %v2737_v8 = vpop.f32.mrf.mxu0 }
0x1115   :  { %v2748_v31 = vpop.f32.mrf.mxu1 }
0x1116   :  { %v1788_v32 = vadd.f32 %v3153_v56, %v1785_v7 }
0x1118   :  { %v1789_v33 = vmul.f32 %v1788_v32, %v3011_v16 }
0x111a   :  { %2865 = vtanh.f32 %v1789_v33  ;;  %v1876_v36 = vpop.f32.mrf.mxu0 }
0x111b   :  { %v1957_v38 = vadd.f32 %v1876_v36, %v173_v34 }
0x111c   :  { %v2759_v39 = vpop.f32.mrf.mxu0 }
0x111d   :  { %v1958_v57 = vmul.f32 %v1957_v38, %v3011_v16 }
0x111f   :  { %2867 = vtanh.f32 %v1958_v57 }
0x1127   :  { %v2866_v58 = vpop.eup %2865 }
0x1128   :  { %1795 = vrot.lane.b32.xlu0 %v2866_v58, %s2901_s26  ;;  %v1791_v60 = vmul.f32 0.5, %v2866_v58 }
0x112a   :  { %v1792_v61 = vadd.f32 0.5, %v1791_v60 }
0x112c   :  { %v2868_v59 = vpop.eup %2867  ;;  %v1793_v5 = vmul.f32 %v1792_v61, %v3379_v41 }
0x112d   :  { %1964 = vrot.lane.b32.xlu1 %v2868_v59, %s2901_s26  ;;  %v1960_v63 = vmul.f32 0.5, %v2868_v59 }
0x112f   :  { %v1961_v12 = vadd.f32 0.5, %v1960_v63 }
0x1131   :  { %v1962_v9 = vmul.f32 %v1961_v12, %v3381_v42 }
0x119a   :  { %v1796_v62 = vpop.permute.xlu0 %1795 }
0x119b   :  { %v1798_v1 = vmul.f32 %v1796_v62, %v1792_v61 }
0x119d   :  { %1800 = vrot.lane.b32.xlu0 %v1798_v1, %s2902_s27 }
0x119f   :  { %v1965_v54 = vpop.permute.xlu1 %1964 }
0x11a0   :  { %v1967_v3 = vmul.f32 %v1965_v54, %v1961_v12 }
0x11a2   :  { %1969 = vrot.lane.b32.xlu1 %v1967_v3, %s2902_s27 }
0x120f   :  { %v1801_v50 = vpop.permute.xlu0 %1800 }
0x1210   :  { %v3432_v6 = vadd.f32 %v1801_v50, %v1793_v5 }
0x1212   :  { %2869 = vtanh.f32 %v3432_v6 }
0x1214   :  { %v1970_v10 = vpop.permute.xlu1 %1969 }
0x1215   :  { %v3436_v11 = vadd.f32 %v1970_v10, %v1962_v9  ;;  %v2897_v10 = vld [vmem:[%s3539_s6] ss:$0 sm:$0xff] }
0x1217   :  { %2871 = vtanh.f32 %v3436_v11 }
0x121f   :  { %v2870_v13 = vpop.eup %2869 }
0x1220   :  { %1806 = vrot.lane.b32.xlu0 %v2870_v13, %s2901_s26 }
0x1224   :  { %v2872_v14 = vpop.eup %2871 }
0x1225   :  { %1975 = vrot.lane.b32.xlu1 %v2872_v14, %s2901_s26 }
0x1292   :  { %v1807_v15 = vpop.permute.xlu0 %1806 }
0x1293   :  { %v1809_v17 = vmul.f32 %v1807_v15, %v1792_v61 }
0x1295   :  { %1881 = vrot.lane.b32.xlu0 %v1809_v17, %s2902_s27 }
0x1297   :  { %v1976_v18 = vpop.permute.xlu1 %1975 }
0x1298   :  { %v1978_v19 = vmul.f32 %v1976_v18, %v1961_v12 }
0x129a   :  { %1980 = vrot.lane.b32.xlu1 %v1978_v19, %s2902_s27 }
0x1307   :  { %v1882_v20 = vpop.permute.xlu0 %1881 }
0x1308   :  { %2769 = vmatmul.mubr.msk.f32.vlgmr.msra.gmra.mxu1 %vm216_vm5, %v1882_v20  ;;  %v2403_v20 = vld [vmem:[%s3540_s7] ss:$0 sm:$0xff] }
0x1309   :  { %2783 = vmatpush3.msra.mxu1 %v2885_v22  ;;  %2790 = vmatprep.mubr.msk.f32.mxu1 %vm2899_vm0, %v2898_v0 }
0x130a   :  { %2784 = vmatprep.subr.mxu1 %v2898_v0 }
0x130b   :  { %2785 = vmatpush3.msra.mxu1 %v2886_v23 }
0x130c   :  { %2786 = vmatprep.subr.mxu1 %v2898_v0  ;;  %v1981_v24 = vpop.permute.xlu1 %1980 }
0x130d   :  { %2787 = vmatpush3.msra.mxu1 %v2887_v51  ;;  %2780 = vmatmul.mubr.msk.f32.vlgmr.msra.gmra.mxu0 %vm216_vm5, %v1981_v24  ;;  %v14_v51 = vstv %s3541_s8 }
0x130e   :  { %2788 = vmatprep.subr.mxu1 %v2898_v0  ;;  %2794 = vmatpush3.msra.mxu0 %v2888_v21  ;;  %15 = vst [vmem:[#allocation3] sm:$0x1] %v14_v51 }
0x130f   :  { %2789 = vmatpush3.msra.mxu1 %v2889_v25  ;;  %2795 = vmatprep.subr.mxu0 %v2898_v0 }
0x1310   :  { %2791 = vmatmul.mubr.msk.f32.vlgmr.msra.gmra.mxu1 %vm216_vm5, %v1981_v24  ;;  %2804 = vmatprep.subr.mxu1 %v2898_v0 }
0x1311   :  { %2805 = vmatpush3.msra.mxu1 %v2890_v26  ;;  %2796 = vmatpush3.msra.mxu0 %v2891_v27 }
0x1312   :  { %2806 = vmatprep.subr.mxu1 %v2898_v0  ;;  %2797 = vmatprep.subr.mxu0 %v2898_v0 }
0x1313   :  { %2807 = vmatpush3.msra.mxu1 %v2892_v29  ;;  %2798 = vmatpush3.msra.mxu0 %v2893_v28 }
0x1314   :  { %2808 = vmatprep.subr.mxu1 %v2898_v0  ;;  %2799 = vmatprep.subr.mxu0 %v2898_v0 }
0x1315   :  { %2809 = vmatpush3.msra.mxu1 %v2894_v30  ;;  %2812 = vmatprep.mubr.msk.f32.mxu1 %vm2899_vm0, %v2898_v0  ;;  %v2404_v30 = vld [vmem:[#allocation3] ss:$0 sm:$0xff] }
0x1316   :  { %2810 = vmatprep.subr.mxu1 %v2898_v0  ;;  %2800 = vmatpush3.msra.mxu0 %v2895_v35 }
0x1317   :  { %2811 = vmatpush3.msra.mxu1 %v3096_v43  ;;  %2801 = vmatprep.mubr.msk.f32.mxu0 %vm2899_vm0, %v2898_v0 }
0x13c8   :  { %v1951_v37 = vpop.f32.mrf.mxu1 }
0x13ca   :  { %v2770_v40 = vpop.f32.mrf.mxu1 }
0x13cd   :  { %v2050_v41 = vpop.f32.mrf.mxu0 }
0x13ce   :  { %v2051_v42 = vadd.f32 %v2050_v41, %v1951_v37 }
0x13cf   :  { %v2781_v45 = vpop.f32.mrf.mxu0 }
0x13d0   :  { %v2054_v46 = vadd.f32 %v3153_v56, %v2051_v42  ;;  %v2142_v47 = vpop.f32.mrf.mxu1 }
0x13d1   :  { %v2223_v49 = vadd.f32 %v2142_v47, %v178_v52 }
0x13d2   :  { %v2055_v43 = vmul.f32 %v2054_v46, %v3011_v16  ;;  %v2792_v48 = vpop.f32.mrf.mxu1 }
0x13d3   :  { %v2224_v0 = vmul.f32 %v2223_v49, %v3011_v16 }
0x13d4   :  { %2873 = vtanh.f32 %v2055_v43 }
0x13d5   :  { %2875 = vtanh.f32 %v2224_v0 }
0x13e1   :  { %v2874_v55 = vpop.eup %2873 }
0x13e2   :  { %v2876_v2 = vpop.eup %2875  ;;  %2061 = vrot.lane.b32.xlu0 %v2874_v55, %s2901_s26  ;;  %v2057_v4 = vmul.f32 0.5, %v2874_v55 }
0x13e3   :  { %2230 = vrot.lane.b32.xlu1 %v2876_v2, %s2901_s26  ;;  %v2226_v53 = vmul.f32 0.5, %v2876_v2 }
0x13e4   :  { %v2058_v7 = vadd.f32 0.5, %v2057_v4 }
0x13e5   :  { %v2227_v8 = vadd.f32 0.5, %v2226_v53 }
0x13e6   :  { %v2059_v34 = vmul.f32 %v2058_v7, %v3432_v6 }
0x13e7   :  { %v2228_v36 = vmul.f32 %v2227_v8, %v3436_v11 }
0x1454   :  { %v2062_v56 = vpop.permute.xlu0 %2061 }
0x1455   :  { %v2231_v31 = vpop.permute.xlu1 %2230  ;;  %v2064_v32 = vmul.f32 %v2062_v56, %v2058_v7 }
0x1456   :  { %v2233_v33 = vmul.f32 %v2231_v31, %v2227_v8 }
0x1457   :  { %2066 = vrot.lane.b32.xlu0 %v2064_v32, %s2902_s27 }
0x1458   :  { %2235 = vrot.lane.b32.xlu1 %v2233_v33, %s2902_s27 }
0x14c9   :  { %v2067_v38 = vpop.permute.xlu0 %2066 }
0x14ca   :  { %v2236_v39 = vpop.permute.xlu1 %2235  ;;  %v2069_v57 = vadd.f32 %v2067_v38, %v2059_v34 }
0x14cb   :  { %v2238_v58 = vadd.f32 %v2236_v39, %v2228_v36 }
0x14cc   :  { %2877 = vtanh.f32 %v2069_v57 }
0x14cd   :  { %2879 = vtanh.f32 %v2238_v58 }
0x14d9   :  { %v2878_v59 = vpop.eup %2877 }
0x14da   :  { %v2880_v60 = vpop.eup %2879  ;;  %2072 = vrot.lane.b32.xlu0 %v2878_v59, %s2901_s26 }
0x14db   :  { %2241 = vrot.lane.b32.xlu1 %v2880_v60, %s2901_s26 }
0x154c   :  { %v2073_v61 = vpop.permute.xlu0 %2072 }
0x154d   :  { %v2242_v62 = vpop.permute.xlu1 %2241  ;;  %v2075_v63 = vmul.f32 %v2073_v61, %v2058_v7 }
0x154e   :  { %v2244_v1 = vmul.f32 %v2242_v62, %v2227_v8 }
0x154f   :  { %2147 = vrot.lane.b32.xlu0 %v2075_v63, %s2902_s27 }
0x1550   :  { %2246 = vrot.lane.b32.xlu1 %v2244_v1, %s2902_s27 }
0x15c1   :  { %v2148_v12 = vpop.permute.xlu0 %2147 }
0x15c2   :  { %v2247_v54 = vpop.permute.xlu1 %2246  ;;  %2802 = vmatmul.mubr.msk.f32.vlgmr.msra.gmra.mxu0 %vm216_vm5, %v2148_v12 }
0x15c3   :  { %2813 = vmatmul.mubr.msk.f32.vlgmr.msra.gmra.mxu1 %vm216_vm5, %v2247_v54 }
0x1682   :  { %v2217_v3 = vpop.f32.mrf.mxu0 }
0x1683   :  { %v2316_v5 = vpop.f32.mrf.mxu1 }
0x1684   :  { %v2317_v50 = vadd.f32 %v2316_v5, %v2217_v3  ;;  %v2803_v6 = vpop.f32.mrf.mxu0 }
0x1685   :  { %v2814_v9 = vpop.f32.mrf.mxu1 }
0x1686   :  { %v2320_v11 = vadd.f32 %v2897_v10, %v2317_v50 }
0x1688   :  { %v2321_v13 = vmul.f32 %v2320_v11, %v3011_v16 }
0x168a   :  { %2881 = vtanh.f32 %v2321_v13 }
0x1697   :  { %v2882_v14 = vpop.eup %2881 }
0x1698   :  { %2327 = vrot.lane.b32.xlu0 %v2882_v14, %s2901_s26  ;;  %v2323_v15 = vmul.f32 0.5, %v2882_v14 }
0x169a   :  { %v2324_v17 = vadd.f32 0.5, %v2323_v15 }
0x169c   :  { %v2325_v22 = vmul.f32 %v2324_v17, %v2069_v57 }
0x170a   :  { %v2328_v18 = vpop.permute.xlu0 %2327 }
0x170b   :  { %v2330_v19 = vmul.f32 %v2328_v18, %v2324_v17 }
0x170d   :  { %2332 = vrot.lane.b32.xlu1 %v2330_v19, %s2902_s27 }
0x1711   :  { %2347 = vrot.lane.b32.xlu1 %v2403_v20, %s2903_s1 }
0x177f   :  { %v2333_v23 = vpop.permute.xlu1 %2332 }
0x1780   :  { %v2335_v24 = vadd.f32 %v2333_v23, %v2325_v22 }
0x1782   :  { %2883 = vtanh.f32 %v2335_v24 }
0x1783   :  { %v2348_v25 = vpop.permute.xlu1 %2347 }
0x178f   :  { %v2884_v16 = vpop.eup %2883 }
0x1790   :  { %2338 = vrot.lane.b32.xlu0 %v2884_v16, %s2901_s26 }
0x1802   :  { %v2339_v21 = vpop.permute.xlu0 %2338 }
0x1803   :  { %v2341_v26 = vmul.f32 %v2339_v21, %v2324_v17 }
0x1805   :  { %v2350_v27 = vmul.f32 %v2348_v25, %v2341_v26 }
0x1807   :  { %2352 = vrot.lane.b32.xlu0 %v2350_v27, %s2902_s27 }
0x1879   :  { %v2353_v29 = vpop.permute.xlu0 %2352 }
0x187a   :  { %v2355_v28 = vsel %vm216_vm5, %v2353_v29, 0.0 }
0x187b   :  { %2356 = vadd.xlane.f32.xlu1 %v2355_v28 }
0x1904   :  { %v2357_v35 = vpop.xlane.xlu1 %2356 }
0x1905   :  { %v2364_v37 = vadd.f32 %v2404_v30, %v2357_v35 }
0x1907   :  { %2366 = vst.msk [vmem:[%s3542_s9] sm:$0xff] %vm2365_vm6, %v2364_v37 }

</bundles_post_ra>
